<compile_context>
chip_gen: v7x
topology: tpu7x:2x2x1
jax: 0.10.0
libtpu: 0.0.40
codegen_flags: <defaults>
</compile_context>

<pallas_src>
import jax
import jax.numpy as jnp
from jax import lax
from jax.experimental import pallas as pl
from jax.experimental.pallas import tpu as pltpu


def _round_up(x, m):
    return (x + m - 1) // m * m


def _pick_time_chunk(T, bytes_per_step, budget_bytes):
    """Largest time chunk whose double-buffered streamed blocks fit the budget.

    Rounded down to a multiple of 8 (for deep unrolling).  T is zero-padded up
    to a multiple of the chunk, so the chunk does NOT have to divide T.
    """
    tc = max(1, int(budget_bytes) // (2 * int(bytes_per_step)))
    tc = min(tc, T)
    if tc >= 8:
        tc = (tc // 8) * 8
    return max(tc, 1)


def _vmem_budgets():
    """(streamed-DMA budget, vmem_limit cap) — generation aware, safe fallback."""
    try:
        vmem_cap = int(pltpu.get_tpu_info().vmem_capacity_bytes)
    except Exception:
        vmem_cap = 64 * 1024 * 1024      # assume v7x-like (64 MiB per TC)
    if vmem_cap >= 96 * 1024 * 1024:     # v5e / v6e: 128 MiB VMEM
        stream_budget = 24 * 1024 * 1024
    else:                                # v7x: 64 MiB per TC — stay conservative
        stream_budget = 8 * 1024 * 1024
    limit_cap = min(48 * 1024 * 1024, (3 * vmem_cap) // 4)
    return stream_budget, limit_cap


def _gru_dir_recurrence_kernel(xp_ref, whh_ref, bhn_ref, out_ref, h_scratch):
    """One time chunk of a single direction's GRU recurrence.

    Grid: (direction, time_chunk) with direction marked "parallel".

    xp_ref:    (TC, Bp, 3Hp)  precomputed x W_ih + b_ih + [b_hr|b_hz|0], bf16
    whh_ref:   (Hp, 3Hp)      recurrent weights (zero-padded), bf16
    bhn_ref:   (1, Hp)        n-gate recurrent bias, f32
    out_ref:   (TC, Bp, Hp)   per-step hidden state, f32
    h_scratch: (Bp, Hp)       hidden carried across time chunks (per direction)
    """
    TC = xp_ref.shape[0]
    Bp = xp_ref.shape[1]
    Hp = out_ref.shape[-1]

    @pl.when(pl.program_id(1) == 0)
    def _init():
        h_scratch[...] = jnp.zeros_like(h_scratch)

    # Hoisted out of the time loop: weights + pre-broadcast n-gate bias.
    whh = whh_ref[...]
    bhn = jnp.broadcast_to(bhn_ref[...], (Bp, Hp))

    def step(j, h):
        xp = xp_ref[j].astype(jnp.float32)                           # (Bp, 3Hp)
        hp = jnp.dot(h.astype(whh.dtype), whh,
                     preferred_element_type=jnp.float32)             # (Bp, 3Hp)
        r = jax.nn.sigmoid(xp[:, 0:Hp] + hp[:, 0:Hp])
        z = jax.nn.sigmoid(xp[:, Hp:2 * Hp] + hp[:, Hp:2 * Hp])
        n = jnp.tanh(xp[:, 2 * Hp:3 * Hp] + r * (hp[:, 2 * Hp:3 * Hp] + bhn))
        h_new = n + z * (h - n)
        out_ref[j] = h_new                                           # lane-dense store
        return h_new

    if TC % 8 == 0:
        unroll = 8
    elif TC % 4 == 0:
        unroll = 4
    elif TC % 2 == 0:
        unroll = 2
    else:
        unroll = 1
    h_final = lax.fori_loop(0, TC, step, h_scratch[...], unroll=unroll)
    h_scratch[...] = h_final


def _pad_gate_cols(w, H, Hp):
    """(..., 3H) gate-major [r|z|n] -> (..., 3Hp), each gate zero-padded to Hp."""
    pad = [(0, 0)] * (w.ndim - 1) + [(0, Hp - H)]
    return jnp.concatenate(
        [jnp.pad(w[..., 0:H], pad),
         jnp.pad(w[..., H:2 * H], pad),
         jnp.pad(w[..., 2 * H:3 * H], pad)], axis=-1)


def _pad_whh(whh, H, Hp):
    """(H, 3H) -> (Hp, 3Hp), zero-padding both gate columns and hidden rows."""
    w = _pad_gate_cols(whh, H, Hp)
    return jnp.pad(w, ((0, Hp - H), (0, 0)))


def make_params(key, vocab_size, input_size, hidden_size):
    """Deterministic synthetic parameters matching nn.GRU(input, hidden//2, bidirectional)."""
    num_directions = 2
    assert hidden_size % num_directions == 0
    H = hidden_size // num_directions
    k = 1.0 / jnp.sqrt(jnp.float32(H))
    keys = jax.random.split(key, 9)

    def unif(k_, shape):
        return jax.random.uniform(k_, shape, jnp.float32, -k, k)

    return {
        "embedding": jax.random.normal(keys[0], (vocab_size, input_size), jnp.float32) * 0.1,
        # Stored pre-transposed relative to PyTorch: W_ih (E, 3H), W_hh (H, 3H),
        # biases (1, 3H); column order is [r | z | n].
        "wih_f": unif(keys[1], (input_size, 3 * H)),
        "whh_f": unif(keys[2], (H, 3 * H)),
        "bih_f": unif(keys[3], (1, 3 * H)),
        "bhh_f": unif(keys[4], (1, 3 * H)),
        "wih_b": unif(keys[5], (input_size, 3 * H)),
        "whh_b": unif(keys[6], (H, 3 * H)),
        "bih_b": unif(keys[7], (1, 3 * H)),
        "bhh_b": unif(keys[8], (1, 3 * H)),
    }


def rnn_encoder_forward(token_ids, params, *,
                        matmul_dtype=jnp.bfloat16,
                        stream_dtype=jnp.bfloat16):
    """Equivalent of RNNEncoder.forward(inputs) with an embedder, lengths=None,
    hidden=None.  Returns (outputs, last_hidden, enc_embedding).

    matmul_dtype / stream_dtype: bf16 by default (MXU-native on all chips and
    half the O(T) HBM traffic); f32 accumulation and f32 elementwise math kept.
    """
    # ---- embedder (wrapper glue: gather from embedding table) ---------------
    emb = jnp.take(params["embedding"], token_ids, axis=0)        # (B, T, E)
    enc_embedding = emb
    B, T, E = emb.shape
    H = params["whh_f"].shape[0]

    Hp = _round_up(H, 128)     # per-direction hidden width, lane aligned
    Bp = _round_up(B, 8)       # batch, sublane aligned

    stream_budget, limit_cap = _vmem_budgets()
    bytes_per_step = Bp * (3 * Hp * jnp.dtype(stream_dtype).itemsize + Hp * 4)
    TC = _pick_time_chunk(T, bytes_per_step, stream_budget)
    T_pad = _round_up(T, TC)
    nchunks = T_pad // TC

    # ---- time-major, batch-padded, time-padded input --------------------------
    x_tm = jnp.transpose(emb, (1, 0, 2)).astype(jnp.float32)      # (T, B, E)
    if Bp != B:
        x_tm = jnp.pad(x_tm, ((0, 0), (0, Bp - B), (0, 0)))
    x_f = x_tm
    x_b = x_tm[::-1]                   # backward direction scans reversed time
    if T_pad != T:
        tpad = ((0, T_pad - T), (0, 0), (0, 0))
        x_f = jnp.pad(x_f, tpad)
        x_b = jnp.pad(x_b, tpad)
    x_both = jnp.stack([x_f, x_b], axis=0)                        # (2, T_pad, Bp, E)

    # ---- gate-padded weights so ONE GEMM emits the kernel layout directly -----
    wih = jnp.stack([_pad_gate_cols(params["wih_f"], H, Hp),
                     _pad_gate_cols(params["wih_b"], H, Hp)], axis=0)   # (2, E, 3Hp)

    def comb_bias(bih, bhh):
        # Fold b_hr / b_hz into the input bias; only b_hn stays in the kernel.
        return bih + jnp.concatenate(
            [bhh[:, :2 * H], jnp.zeros((1, H), bih.dtype)], axis=-1)

    bih = jnp.stack(
        [_pad_gate_cols(comb_bias(params["bih_f"], params["bhh_f"]), H, Hp),
         _pad_gate_cols(comb_bias(params["bih_b"], params["bhh_b"]), H, Hp)],
        axis=0)[:, None]                                           # (2, 1, 1, 3Hp)

    whh = jnp.stack([_pad_whh(params["whh_f"], H, Hp),
                     _pad_whh(params["whh_b"], H, Hp)],
                    axis=0).astype(matmul_dtype)                   # (2, Hp, 3Hp)

    def pad_bhn(bhh):
        return jnp.pad(bhh[:, 2 * H:3 * H], ((0, 0), (0, Hp - H)))
    bhn = jnp.stack([pad_bhn(params["bhh_f"]),
                     pad_bhn(params["bhh_b"])], axis=0)            # (2, 1, Hp)

    # ---- whole-sequence input projection: plain XLA GEMM, streamed in bf16 ----
    xp_all = (jnp.einsum("dtbe,deg->dtbg", x_both, wih) + bih).astype(stream_dtype)

    # ---- VMEM accounting -------------------------------------------------------
    resident = (2 * TC * bytes_per_step                                    # dbl-buffered streams
                + 2 * Hp * 3 * Hp * jnp.dtype(matmul_dtype).itemsize       # W_hh
                + 2 * Hp * 4                                               # b_hn
                + Bp * Hp * 4)                                             # h scratch
    vmem_limit = int(min(limit_cap, max(4 * 1024 * 1024, 2 * resident)))

    # ---- Pallas recurrence: grid = (direction[parallel], time_chunk[arbitrary]) -
    out = pl.pallas_call(
        _gru_dir_recurrence_kernel,
        out_shape=jax.ShapeDtypeStruct((2, T_pad, Bp, Hp), jnp.float32),
        grid=(2, nchunks),
        in_specs=[
            pl.BlockSpec((None, TC, Bp, 3 * Hp), lambda d, i: (d, i, 0, 0)),
            pl.BlockSpec((None, Hp, 3 * Hp), lambda d, i: (d, 0, 0)),
            pl.BlockSpec((None, 1, Hp), lambda d, i: (d, 0, 0)),
        ],
        out_specs=pl.BlockSpec((None, TC, Bp, Hp), lambda d, i: (d, i, 0, 0)),
        scratch_shapes=[pltpu.VMEM((Bp, Hp), jnp.float32)],
        compiler_params=pltpu.CompilerParams(
            dimension_semantics=("parallel", "arbitrary"),
            vmem_limit_bytes=vmem_limit,
        ),
    )(xp_all, whh, bhn)

    # ---- un-pad / un-reverse (wrapper glue) ------------------------------------
    out_f = out[0, :T, :B, :H]                 # forward hidden at original time t
    out_b = out[1, :T, :B, :H][::-1]           # backward scan ran on reversed time
    outputs = jnp.transpose(jnp.concatenate([out_f, out_b], axis=-1), (1, 0, 2))

    # _bridge_bidirectional_hidden: (2, B, H) -> (1, B, 2H).  The final states
    # are the stores at scan step T-1 of each direction (padded steps come after
    # and are sliced off), so no separate last-hidden output is needed.
    last_hidden = jnp.concatenate(
        [out[0, T - 1, :B, :H], out[1, T - 1, :B, :H]], axis=-1)[None, :, :]

    # TODO(synk): the lengths-based pack_padded_sequence / sort-by-length branch
    # of RNNEncoder.forward is not exercised here (lengths=None) and is omitted.
    return outputs, last_hidden, enc_embedding


if __name__ == "__main__":
    VOCAB = 20
    INPUT_SIZE = 16     # embedding dim / GRU input_size
    HIDDEN_SIZE = 32    # bidirectional -> rnn_hidden_size = 16 per direction
    BATCH = 2
    SEQ = 8

    key = jax.random.PRNGKey(0)
    pkey, ikey = jax.random.split(key)
    params = make_params(pkey, VOCAB, INPUT_SIZE, HIDDEN_SIZE)
    token_ids = jax.random.randint(ikey, (BATCH, SEQ), 0, VOCAB, dtype=jnp.int32)

    outputs, last_hidden, enc_embedding = rnn_encoder_forward(token_ids, params)
    jax.block_until_ready((outputs, last_hidden, enc_embedding))

    assert outputs.shape == (BATCH, SEQ, HIDDEN_SIZE)
    assert last_hidden.shape == (1, BATCH, HIDDEN_SIZE)
    assert enc_embedding.shape == (BATCH, SEQ, INPUT_SIZE)
    assert bool(jnp.all(jnp.isfinite(outputs)))
    assert bool(jnp.all(jnp.isfinite(last_hidden)))
    print("KERNEL_OK")
</pallas_src>

<mosaic_0001>
module attributes {stable_mosaic.version = 11 : i64} {
  func.func @_gru_dir_recurrence_kernel(%arg0: i32, %arg1: i32, %arg2: memref<1x8x8x384xbf16, #tpu.memory_space<vmem>>, %arg3: memref<1x128x384xbf16, #tpu.memory_space<vmem>>, %arg4: memref<1x1x128xf32, #tpu.memory_space<vmem>>, %arg5: memref<1x8x8x128xf32, #tpu.memory_space<vmem>>, %arg6: memref<8x128xf32, #tpu.memory_space<vmem>>) attributes {dimension_semantics = [#tpu.dimension_semantics<parallel>, #tpu.dimension_semantics<arbitrary>], iteration_bounds = array<i64: 2, 1>, scalar_prefetch = 0 : i64, scratch_operands = 1 : i64, tpu.core_type = #tpu.core_type<tc>, window_params = [{transform_indices = @transform_0, window_bounds = array<i64: 1, 8, 8, 384>}, {transform_indices = @transform_1, window_bounds = array<i64: 1, 128, 384>}, {transform_indices = @transform_2, window_bounds = array<i64: 1, 1, 128>}, {transform_indices = @transform_3, window_bounds = array<i64: 1, 8, 8, 128>}]} {
    %c0_i32 = arith.constant 0 : i32
    %0 = arith.cmpi eq, %arg1, %c0_i32 : i32
    %1 = arith.extui %0 : i1 to i32
    %c0_i32_0 = arith.constant 0 : i32
    %2 = arith.cmpi ne, %1, %c0_i32_0 : i32
    scf.if %2 {
      %cst_82 = arith.constant 0.000000e+00 : f32
      %291 = vector.broadcast %cst_82 : f32 to vector<8x128xf32>
      %c0_83 = arith.constant 0 : index
      %c0_84 = arith.constant 0 : index
      %292 = vector.load %arg6[%c0_83, %c0_84] : memref<8x128xf32, #tpu.memory_space<vmem>>, vector<8x128xf32>
      tpu.vector_store %arg6[%c0_83, %c0_84], %291 {strides = array<i32>} : memref<8x128xf32, #tpu.memory_space<vmem>>, vector<8x128xf32>,
    } else {
    }
    %c0 = arith.constant 0 : index
    %c0_1 = arith.constant 0 : index
    %c0_2 = arith.constant 0 : index
    %3 = vector.load %arg3[%c0, %c0_1, %c0_2] : memref<1x128x384xbf16, #tpu.memory_space<vmem>>, vector<1x128x384xbf16>
    %4 = vector.shape_cast %3 : vector<1x128x384xbf16> to vector<128x384xbf16>
    %c0_3 = arith.constant 0 : index
    %c0_4 = arith.constant 0 : index
    %c0_5 = arith.constant 0 : index
    %5 = vector.load %arg4[%c0_3, %c0_4, %c0_5] : memref<1x1x128xf32, #tpu.memory_space<vmem>>, vector<1x1x128xf32>
    %6 = vector.shape_cast %5 : vector<1x1x128xf32> to vector<1x128xf32>
    %7 = vector.shape_cast %6 : vector<1x128xf32> to vector<1x128xf32>
    %8 = vector.broadcast %7 : vector<1x128xf32> to vector<8x128xf32>
    %c0_6 = arith.constant 0 : index
    %c0_7 = arith.constant 0 : index
    %9 = vector.load %arg6[%c0_6, %c0_7] : memref<8x128xf32, #tpu.memory_space<vmem>>, vector<8x128xf32>
    %c0_i32_8 = arith.constant 0 : i32
    %c0_9 = arith.constant 0 : index
    %10 = arith.index_cast %c0_i32_8 : i32 to index
    %c0_10 = arith.constant 0 : index
    %c0_11 = arith.constant 0 : index
    %11 = vector.load %arg2[%c0_9, %10, %c0_10, %c0_11] : memref<1x8x8x384xbf16, #tpu.memory_space<vmem>>, vector<1x1x8x384xbf16>
    %12 = vector.shape_cast %11 : vector<1x1x8x384xbf16> to vector<8x384xbf16>
    %13 = arith.extf %12 : vector<8x384xbf16> to vector<8x384xf32>
    %14 = arith.truncf %9 : vector<8x128xf32> to vector<8x128xbf16>
    %cst = arith.constant dense<0.000000e+00> : vector<8x384xf32>
    %15 = tpu.matmul %14, %4, %cst {dimension_numbers = #tpu.dot_dimension_numbers<[1], [0], [0], [1], [0, 0, 1, 1], [], []>} : vector<8x128xbf16>, vector<128x384xbf16>, vector<8x384xf32> -> vector<8x384xf32>
    %16 = vector.extract_strided_slice %13 {offsets = [0, 0], sizes = [8, 128], strides = [1, 1]} : vector<8x384xf32> to vector<8x128xf32>
    %17 = vector.extract_strided_slice %15 {offsets = [0, 0], sizes = [8, 128], strides = [1, 1]} : vector<8x384xf32> to vector<8x128xf32>
    %18 = arith.addf %16, %17 : vector<8x128xf32>
    %19 = arith.negf %18 : vector<8x128xf32>
    %20 = math.exp %19 : vector<8x128xf32>
    %cst_12 = arith.constant 1.000000e+00 : f32
    %21 = vector.broadcast %cst_12 : f32 to vector<8x128xf32>
    %22 = arith.addf %21, %20 : vector<8x128xf32>
    %23 = arith.divf %21, %22 : vector<8x128xf32>
    %24 = vector.extract_strided_slice %13 {offsets = [0, 128], sizes = [8, 128], strides = [1, 1]} : vector<8x384xf32> to vector<8x128xf32>
    %25 = vector.extract_strided_slice %15 {offsets = [0, 128], sizes = [8, 128], strides = [1, 1]} : vector<8x384xf32> to vector<8x128xf32>
    %26 = arith.addf %24, %25 : vector<8x128xf32>
    %27 = arith.negf %26 : vector<8x128xf32>
    %28 = math.exp %27 : vector<8x128xf32>
    %cst_13 = arith.constant 1.000000e+00 : f32
    %29 = vector.broadcast %cst_13 : f32 to vector<8x128xf32>
    %30 = arith.addf %29, %28 : vector<8x128xf32>
    %31 = arith.divf %29, %30 : vector<8x128xf32>
    %32 = vector.extract_strided_slice %13 {offsets = [0, 256], sizes = [8, 128], strides = [1, 1]} : vector<8x384xf32> to vector<8x128xf32>
    %33 = vector.extract_strided_slice %15 {offsets = [0, 256], sizes = [8, 128], strides = [1, 1]} : vector<8x384xf32> to vector<8x128xf32>
    %34 = arith.addf %33, %8 : vector<8x128xf32>
    %35 = arith.mulf %23, %34 : vector<8x128xf32>
    %36 = arith.addf %32, %35 : vector<8x128xf32>
    %37 = math.tanh %36 : vector<8x128xf32>
    %38 = arith.subf %9, %37 : vector<8x128xf32>
    %39 = arith.mulf %31, %38 : vector<8x128xf32>
    %40 = arith.addf %37, %39 : vector<8x128xf32>
    %c0_14 = arith.constant 0 : index
    %41 = arith.index_cast %c0_i32_8 : i32 to index
    %c0_15 = arith.constant 0 : index
    %c0_16 = arith.constant 0 : index
    %42 = vector.load %arg5[%c0_14, %41, %c0_15, %c0_16] : memref<1x8x8x128xf32, #tpu.memory_space<vmem>>, vector<1x1x8x128xf32>
    %43 = vector.shape_cast %42 : vector<1x1x8x128xf32> to vector<8x128xf32>
    %44 = vector.shape_cast %40 : vector<8x128xf32> to vector<1x1x8x128xf32>
    tpu.vector_store %arg5[%c0_14, %41, %c0_15, %c0_16], %44 {strides = array<i32>} : memref<1x8x8x128xf32, #tpu.memory_space<vmem>>, vector<1x1x8x128xf32>,
    %c1_i32 = arith.constant 1 : i32
    %c0_17 = arith.constant 0 : index
    %45 = arith.index_cast %c1_i32 : i32 to index
    %c0_18 = arith.constant 0 : index
    %c0_19 = arith.constant 0 : index
    %46 = vector.load %arg2[%c0_17, %45, %c0_18, %c0_19] : memref<1x8x8x384xbf16, #tpu.memory_space<vmem>>, vector<1x1x8x384xbf16>
    %47 = vector.shape_cast %46 : vector<1x1x8x384xbf16> to vector<8x384xbf16>
    %48 = arith.extf %47 : vector<8x384xbf16> to vector<8x384xf32>
    %49 = arith.truncf %40 : vector<8x128xf32> to vector<8x128xbf16>
    %cst_20 = arith.constant dense<0.000000e+00> : vector<8x384xf32>
    %50 = tpu.matmul %49, %4, %cst_20 {dimension_numbers = #tpu.dot_dimension_numbers<[1], [0], [0], [1], [0, 0, 1, 1], [], []>} : vector<8x128xbf16>, vector<128x384xbf16>, vector<8x384xf32> -> vector<8x384xf32>
    %51 = vector.extract_strided_slice %48 {offsets = [0, 0], sizes = [8, 128], strides = [1, 1]} : vector<8x384xf32> to vector<8x128xf32>
    %52 = vector.extract_strided_slice %50 {offsets = [0, 0], sizes = [8, 128], strides = [1, 1]} : vector<8x384xf32> to vector<8x128xf32>
    %53 = arith.addf %51, %52 : vector<8x128xf32>
    %54 = arith.negf %53 : vector<8x128xf32>
    %55 = math.exp %54 : vector<8x128xf32>
    %cst_21 = arith.constant 1.000000e+00 : f32
    %56 = vector.broadcast %cst_21 : f32 to vector<8x128xf32>
    %57 = arith.addf %56, %55 : vector<8x128xf32>
    %58 = arith.divf %56, %57 : vector<8x128xf32>
    %59 = vector.extract_strided_slice %48 {offsets = [0, 128], sizes = [8, 128], strides = [1, 1]} : vector<8x384xf32> to vector<8x128xf32>
    %60 = vector.extract_strided_slice %50 {offsets = [0, 128], sizes = [8, 128], strides = [1, 1]} : vector<8x384xf32> to vector<8x128xf32>
    %61 = arith.addf %59, %60 : vector<8x128xf32>
    %62 = arith.negf %61 : vector<8x128xf32>
    %63 = math.exp %62 : vector<8x128xf32>
    %cst_22 = arith.constant 1.000000e+00 : f32
    %64 = vector.broadcast %cst_22 : f32 to vector<8x128xf32>
    %65 = arith.addf %64, %63 : vector<8x128xf32>
    %66 = arith.divf %64, %65 : vector<8x128xf32>
    %67 = vector.extract_strided_slice %48 {offsets = [0, 256], sizes = [8, 128], strides = [1, 1]} : vector<8x384xf32> to vector<8x128xf32>
    %68 = vector.extract_strided_slice %50 {offsets = [0, 256], sizes = [8, 128], strides = [1, 1]} : vector<8x384xf32> to vector<8x128xf32>
    %69 = arith.addf %68, %8 : vector<8x128xf32>
    %70 = arith.mulf %58, %69 : vector<8x128xf32>
    %71 = arith.addf %67, %70 : vector<8x128xf32>
    %72 = math.tanh %71 : vector<8x128xf32>
    %73 = arith.subf %40, %72 : vector<8x128xf32>
    %74 = arith.mulf %66, %73 : vector<8x128xf32>
    %75 = arith.addf %72, %74 : vector<8x128xf32>
    %c0_23 = arith.constant 0 : index
    %76 = arith.index_cast %c1_i32 : i32 to index
    %c0_24 = arith.constant 0 : index
    %c0_25 = arith.constant 0 : index
    %77 = vector.load %arg5[%c0_23, %76, %c0_24, %c0_25] : memref<1x8x8x128xf32, #tpu.memory_space<vmem>>, vector<1x1x8x128xf32>
    %78 = vector.shape_cast %77 : vector<1x1x8x128xf32> to vector<8x128xf32>
    %79 = vector.shape_cast %75 : vector<8x128xf32> to vector<1x1x8x128xf32>
    tpu.vector_store %arg5[%c0_23, %76, %c0_24, %c0_25], %79 {strides = array<i32>} : memref<1x8x8x128xf32, #tpu.memory_space<vmem>>, vector<1x1x8x128xf32>,
    %c2_i32 = arith.constant 2 : i32
    %c0_26 = arith.constant 0 : index
    %80 = arith.index_cast %c2_i32 : i32 to index
    %c0_27 = arith.constant 0 : index
    %c0_28 = arith.constant 0 : index
    %81 = vector.load %arg2[%c0_26, %80, %c0_27, %c0_28] : memref<1x8x8x384xbf16, #tpu.memory_space<vmem>>, vector<1x1x8x384xbf16>
    %82 = vector.shape_cast %81 : vector<1x1x8x384xbf16> to vector<8x384xbf16>
    %83 = arith.extf %82 : vector<8x384xbf16> to vector<8x384xf32>
    %84 = arith.truncf %75 : vector<8x128xf32> to vector<8x128xbf16>
    %cst_29 = arith.constant dense<0.000000e+00> : vector<8x384xf32>
    %85 = tpu.matmul %84, %4, %cst_29 {dimension_numbers = #tpu.dot_dimension_numbers<[1], [0], [0], [1], [0, 0, 1, 1], [], []>} : vector<8x128xbf16>, vector<128x384xbf16>, vector<8x384xf32> -> vector<8x384xf32>
    %86 = vector.extract_strided_slice %83 {offsets = [0, 0], sizes = [8, 128], strides = [1, 1]} : vector<8x384xf32> to vector<8x128xf32>
    %87 = vector.extract_strided_slice %85 {offsets = [0, 0], sizes = [8, 128], strides = [1, 1]} : vector<8x384xf32> to vector<8x128xf32>
    %88 = arith.addf %86, %87 : vector<8x128xf32>
    %89 = arith.negf %88 : vector<8x128xf32>
    %90 = math.exp %89 : vector<8x128xf32>
    %cst_30 = arith.constant 1.000000e+00 : f32
    %91 = vector.broadcast %cst_30 : f32 to vector<8x128xf32>
    %92 = arith.addf %91, %90 : vector<8x128xf32>
    %93 = arith.divf %91, %92 : vector<8x128xf32>
    %94 = vector.extract_strided_slice %83 {offsets = [0, 128], sizes = [8, 128], strides = [1, 1]} : vector<8x384xf32> to vector<8x128xf32>
    %95 = vector.extract_strided_slice %85 {offsets = [0, 128], sizes = [8, 128], strides = [1, 1]} : vector<8x384xf32> to vector<8x128xf32>
    %96 = arith.addf %94, %95 : vector<8x128xf32>
    %97 = arith.negf %96 : vector<8x128xf32>
    %98 = math.exp %97 : vector<8x128xf32>
    %cst_31 = arith.constant 1.000000e+00 : f32
    %99 = vector.broadcast %cst_31 : f32 to vector<8x128xf32>
    %100 = arith.addf %99, %98 : vector<8x128xf32>
    %101 = arith.divf %99, %100 : vector<8x128xf32>
    %102 = vector.extract_strided_slice %83 {offsets = [0, 256], sizes = [8, 128], strides = [1, 1]} : vector<8x384xf32> to vector<8x128xf32>
    %103 = vector.extract_strided_slice %85 {offsets = [0, 256], sizes = [8, 128], strides = [1, 1]} : vector<8x384xf32> to vector<8x128xf32>
    %104 = arith.addf %103, %8 : vector<8x128xf32>
    %105 = arith.mulf %93, %104 : vector<8x128xf32>
    %106 = arith.addf %102, %105 : vector<8x128xf32>
    %107 = math.tanh %106 : vector<8x128xf32>
    %108 = arith.subf %75, %107 : vector<8x128xf32>
    %109 = arith.mulf %101, %108 : vector<8x128xf32>
    %110 = arith.addf %107, %109 : vector<8x128xf32>
    %c0_32 = arith.constant 0 : index
    %111 = arith.index_cast %c2_i32 : i32 to index
    %c0_33 = arith.constant 0 : index
    %c0_34 = arith.constant 0 : index
    %112 = vector.load %arg5[%c0_32, %111, %c0_33, %c0_34] : memref<1x8x8x128xf32, #tpu.memory_space<vmem>>, vector<1x1x8x128xf32>
    %113 = vector.shape_cast %112 : vector<1x1x8x128xf32> to vector<8x128xf32>
    %114 = vector.shape_cast %110 : vector<8x128xf32> to vector<1x1x8x128xf32>
    tpu.vector_store %arg5[%c0_32, %111, %c0_33, %c0_34], %114 {strides = array<i32>} : memref<1x8x8x128xf32, #tpu.memory_space<vmem>>, vector<1x1x8x128xf32>,
    %c3_i32 = arith.constant 3 : i32
    %c0_35 = arith.constant 0 : index
    %115 = arith.index_cast %c3_i32 : i32 to index
    %c0_36 = arith.constant 0 : index
    %c0_37 = arith.constant 0 : index
    %116 = vector.load %arg2[%c0_35, %115, %c0_36, %c0_37] : memref<1x8x8x384xbf16, #tpu.memory_space<vmem>>, vector<1x1x8x384xbf16>
    %117 = vector.shape_cast %116 : vector<1x1x8x384xbf16> to vector<8x384xbf16>
    %118 = arith.extf %117 : vector<8x384xbf16> to vector<8x384xf32>
    %119 = arith.truncf %110 : vector<8x128xf32> to vector<8x128xbf16>
    %cst_38 = arith.constant dense<0.000000e+00> : vector<8x384xf32>
    %120 = tpu.matmul %119, %4, %cst_38 {dimension_numbers = #tpu.dot_dimension_numbers<[1], [0], [0], [1], [0, 0, 1, 1], [], []>} : vector<8x128xbf16>, vector<128x384xbf16>, vector<8x384xf32> -> vector<8x384xf32>
    %121 = vector.extract_strided_slice %118 {offsets = [0, 0], sizes = [8, 128], strides = [1, 1]} : vector<8x384xf32> to vector<8x128xf32>
    %122 = vector.extract_strided_slice %120 {offsets = [0, 0], sizes = [8, 128], strides = [1, 1]} : vector<8x384xf32> to vector<8x128xf32>
    %123 = arith.addf %121, %122 : vector<8x128xf32>
    %124 = arith.negf %123 : vector<8x128xf32>
    %125 = math.exp %124 : vector<8x128xf32>
    %cst_39 = arith.constant 1.000000e+00 : f32
    %126 = vector.broadcast %cst_39 : f32 to vector<8x128xf32>
    %127 = arith.addf %126, %125 : vector<8x128xf32>
    %128 = arith.divf %126, %127 : vector<8x128xf32>
    %129 = vector.extract_strided_slice %118 {offsets = [0, 128], sizes = [8, 128], strides = [1, 1]} : vector<8x384xf32> to vector<8x128xf32>
    %130 = vector.extract_strided_slice %120 {offsets = [0, 128], sizes = [8, 128], strides = [1, 1]} : vector<8x384xf32> to vector<8x128xf32>
    %131 = arith.addf %129, %130 : vector<8x128xf32>
    %132 = arith.negf %131 : vector<8x128xf32>
    %133 = math.exp %132 : vector<8x128xf32>
    %cst_40 = arith.constant 1.000000e+00 : f32
    %134 = vector.broadcast %cst_40 : f32 to vector<8x128xf32>
    %135 = arith.addf %134, %133 : vector<8x128xf32>
    %136 = arith.divf %134, %135 : vector<8x128xf32>
    %137 = vector.extract_strided_slice %118 {offsets = [0, 256], sizes = [8, 128], strides = [1, 1]} : vector<8x384xf32> to vector<8x128xf32>
    %138 = vector.extract_strided_slice %120 {offsets = [0, 256], sizes = [8, 128], strides = [1, 1]} : vector<8x384xf32> to vector<8x128xf32>
    %139 = arith.addf %138, %8 : vector<8x128xf32>
    %140 = arith.mulf %128, %139 : vector<8x128xf32>
    %141 = arith.addf %137, %140 : vector<8x128xf32>
    %142 = math.tanh %141 : vector<8x128xf32>
    %143 = arith.subf %110, %142 : vector<8x128xf32>
    %144 = arith.mulf %136, %143 : vector<8x128xf32>
    %145 = arith.addf %142, %144 : vector<8x128xf32>
    %c0_41 = arith.constant 0 : index
    %146 = arith.index_cast %c3_i32 : i32 to index
    %c0_42 = arith.constant 0 : index
    %c0_43 = arith.constant 0 : index
    %147 = vector.load %arg5[%c0_41, %146, %c0_42, %c0_43] : memref<1x8x8x128xf32, #tpu.memory_space<vmem>>, vector<1x1x8x128xf32>
    %148 = vector.shape_cast %147 : vector<1x1x8x128xf32> to vector<8x128xf32>
    %149 = vector.shape_cast %145 : vector<8x128xf32> to vector<1x1x8x128xf32>
    tpu.vector_store %arg5[%c0_41, %146, %c0_42, %c0_43], %149 {strides = array<i32>} : memref<1x8x8x128xf32, #tpu.memory_space<vmem>>, vector<1x1x8x128xf32>,
    %c4_i32 = arith.constant 4 : i32
    %c0_44 = arith.constant 0 : index
    %150 = arith.index_cast %c4_i32 : i32 to index
    %c0_45 = arith.constant 0 : index
    %c0_46 = arith.constant 0 : index
    %151 = vector.load %arg2[%c0_44, %150, %c0_45, %c0_46] : memref<1x8x8x384xbf16, #tpu.memory_space<vmem>>, vector<1x1x8x384xbf16>
    %152 = vector.shape_cast %151 : vector<1x1x8x384xbf16> to vector<8x384xbf16>
    %153 = arith.extf %152 : vector<8x384xbf16> to vector<8x384xf32>
    %154 = arith.truncf %145 : vector<8x128xf32> to vector<8x128xbf16>
    %cst_47 = arith.constant dense<0.000000e+00> : vector<8x384xf32>
    %155 = tpu.matmul %154, %4, %cst_47 {dimension_numbers = #tpu.dot_dimension_numbers<[1], [0], [0], [1], [0, 0, 1, 1], [], []>} : vector<8x128xbf16>, vector<128x384xbf16>, vector<8x384xf32> -> vector<8x384xf32>
    %156 = vector.extract_strided_slice %153 {offsets = [0, 0], sizes = [8, 128], strides = [1, 1]} : vector<8x384xf32> to vector<8x128xf32>
    %157 = vector.extract_strided_slice %155 {offsets = [0, 0], sizes = [8, 128], strides = [1, 1]} : vector<8x384xf32> to vector<8x128xf32>
    %158 = arith.addf %156, %157 : vector<8x128xf32>
    %159 = arith.negf %158 : vector<8x128xf32>
    %160 = math.exp %159 : vector<8x128xf32>
    %cst_48 = arith.constant 1.000000e+00 : f32
    %161 = vector.broadcast %cst_48 : f32 to vector<8x128xf32>
    %162 = arith.addf %161, %160 : vector<8x128xf32>
    %163 = arith.divf %161, %162 : vector<8x128xf32>
    %164 = vector.extract_strided_slice %153 {offsets = [0, 128], sizes = [8, 128], strides = [1, 1]} : vector<8x384xf32> to vector<8x128xf32>
    %165 = vector.extract_strided_slice %155 {offsets = [0, 128], sizes = [8, 128], strides = [1, 1]} : vector<8x384xf32> to vector<8x128xf32>
    %166 = arith.addf %164, %165 : vector<8x128xf32>
    %167 = arith.negf %166 : vector<8x128xf32>
    %168 = math.exp %167 : vector<8x128xf32>
    %cst_49 = arith.constant 1.000000e+00 : f32
    %169 = vector.broadcast %cst_49 : f32 to vector<8x128xf32>
    %170 = arith.addf %169, %168 : vector<8x128xf32>
    %171 = arith.divf %169, %170 : vector<8x128xf32>
    %172 = vector.extract_strided_slice %153 {offsets = [0, 256], sizes = [8, 128], strides = [1, 1]} : vector<8x384xf32> to vector<8x128xf32>
    %173 = vector.extract_strided_slice %155 {offsets = [0, 256], sizes = [8, 128], strides = [1, 1]} : vector<8x384xf32> to vector<8x128xf32>
    %174 = arith.addf %173, %8 : vector<8x128xf32>
    %175 = arith.mulf %163, %174 : vector<8x128xf32>
    %176 = arith.addf %172, %175 : vector<8x128xf32>
    %177 = math.tanh %176 : vector<8x128xf32>
    %178 = arith.subf %145, %177 : vector<8x128xf32>
    %179 = arith.mulf %171, %178 : vector<8x128xf32>
    %180 = arith.addf %177, %179 : vector<8x128xf32>
    %c0_50 = arith.constant 0 : index
    %181 = arith.index_cast %c4_i32 : i32 to index
    %c0_51 = arith.constant 0 : index
    %c0_52 = arith.constant 0 : index
    %182 = vector.load %arg5[%c0_50, %181, %c0_51, %c0_52] : memref<1x8x8x128xf32, #tpu.memory_space<vmem>>, vector<1x1x8x128xf32>
    %183 = vector.shape_cast %182 : vector<1x1x8x128xf32> to vector<8x128xf32>
    %184 = vector.shape_cast %180 : vector<8x128xf32> to vector<1x1x8x128xf32>
    tpu.vector_store %arg5[%c0_50, %181, %c0_51, %c0_52], %184 {strides = array<i32>} : memref<1x8x8x128xf32, #tpu.memory_space<vmem>>, vector<1x1x8x128xf32>,
    %c5_i32 = arith.constant 5 : i32
    %c0_53 = arith.constant 0 : index
    %185 = arith.index_cast %c5_i32 : i32 to index
    %c0_54 = arith.constant 0 : index
    %c0_55 = arith.constant 0 : index
    %186 = vector.load %arg2[%c0_53, %185, %c0_54, %c0_55] : memref<1x8x8x384xbf16, #tpu.memory_space<vmem>>, vector<1x1x8x384xbf16>
    %187 = vector.shape_cast %186 : vector<1x1x8x384xbf16> to vector<8x384xbf16>
    %188 = arith.extf %187 : vector<8x384xbf16> to vector<8x384xf32>
    %189 = arith.truncf %180 : vector<8x128xf32> to vector<8x128xbf16>
    %cst_56 = arith.constant dense<0.000000e+00> : vector<8x384xf32>
    %190 = tpu.matmul %189, %4, %cst_56 {dimension_numbers = #tpu.dot_dimension_numbers<[1], [0], [0], [1], [0, 0, 1, 1], [], []>} : vector<8x128xbf16>, vector<128x384xbf16>, vector<8x384xf32> -> vector<8x384xf32>
    %191 = vector.extract_strided_slice %188 {offsets = [0, 0], sizes = [8, 128], strides = [1, 1]} : vector<8x384xf32> to vector<8x128xf32>
    %192 = vector.extract_strided_slice %190 {offsets = [0, 0], sizes = [8, 128], strides = [1, 1]} : vector<8x384xf32> to vector<8x128xf32>
    %193 = arith.addf %191, %192 : vector<8x128xf32>
    %194 = arith.negf %193 : vector<8x128xf32>
    %195 = math.exp %194 : vector<8x128xf32>
    %cst_57 = arith.constant 1.000000e+00 : f32
    %196 = vector.broadcast %cst_57 : f32 to vector<8x128xf32>
    %197 = arith.addf %196, %195 : vector<8x128xf32>
    %198 = arith.divf %196, %197 : vector<8x128xf32>
    %199 = vector.extract_strided_slice %188 {offsets = [0, 128], sizes = [8, 128], strides = [1, 1]} : vector<8x384xf32> to vector<8x128xf32>
    %200 = vector.extract_strided_slice %190 {offsets = [0, 128], sizes = [8, 128], strides = [1, 1]} : vector<8x384xf32> to vector<8x128xf32>
    %201 = arith.addf %199, %200 : vector<8x128xf32>
    %202 = arith.negf %201 : vector<8x128xf32>
    %203 = math.exp %202 : vector<8x128xf32>
    %cst_58 = arith.constant 1.000000e+00 : f32
    %204 = vector.broadcast %cst_58 : f32 to vector<8x128xf32>
    %205 = arith.addf %204, %203 : vector<8x128xf32>
    %206 = arith.divf %204, %205 : vector<8x128xf32>
    %207 = vector.extract_strided_slice %188 {offsets = [0, 256], sizes = [8, 128], strides = [1, 1]} : vector<8x384xf32> to vector<8x128xf32>
    %208 = vector.extract_strided_slice %190 {offsets = [0, 256], sizes = [8, 128], strides = [1, 1]} : vector<8x384xf32> to vector<8x128xf32>
    %209 = arith.addf %208, %8 : vector<8x128xf32>
    %210 = arith.mulf %198, %209 : vector<8x128xf32>
    %211 = arith.addf %207, %210 : vector<8x128xf32>
    %212 = math.tanh %211 : vector<8x128xf32>
    %213 = arith.subf %180, %212 : vector<8x128xf32>
    %214 = arith.mulf %206, %213 : vector<8x128xf32>
    %215 = arith.addf %212, %214 : vector<8x128xf32>
    %c0_59 = arith.constant 0 : index
    %216 = arith.index_cast %c5_i32 : i32 to index
    %c0_60 = arith.constant 0 : index
    %c0_61 = arith.constant 0 : index
    %217 = vector.load %arg5[%c0_59, %216, %c0_60, %c0_61] : memref<1x8x8x128xf32, #tpu.memory_space<vmem>>, vector<1x1x8x128xf32>
    %218 = vector.shape_cast %217 : vector<1x1x8x128xf32> to vector<8x128xf32>
    %219 = vector.shape_cast %215 : vector<8x128xf32> to vector<1x1x8x128xf32>
    tpu.vector_store %arg5[%c0_59, %216, %c0_60, %c0_61], %219 {strides = array<i32>} : memref<1x8x8x128xf32, #tpu.memory_space<vmem>>, vector<1x1x8x128xf32>,
    %c6_i32 = arith.constant 6 : i32
    %c0_62 = arith.constant 0 : index
    %220 = arith.index_cast %c6_i32 : i32 to index
    %c0_63 = arith.constant 0 : index
    %c0_64 = arith.constant 0 : index
    %221 = vector.load %arg2[%c0_62, %220, %c0_63, %c0_64] : memref<1x8x8x384xbf16, #tpu.memory_space<vmem>>, vector<1x1x8x384xbf16>
    %222 = vector.shape_cast %221 : vector<1x1x8x384xbf16> to vector<8x384xbf16>
    %223 = arith.extf %222 : vector<8x384xbf16> to vector<8x384xf32>
    %224 = arith.truncf %215 : vector<8x128xf32> to vector<8x128xbf16>
    %cst_65 = arith.constant dense<0.000000e+00> : vector<8x384xf32>
    %225 = tpu.matmul %224, %4, %cst_65 {dimension_numbers = #tpu.dot_dimension_numbers<[1], [0], [0], [1], [0, 0, 1, 1], [], []>} : vector<8x128xbf16>, vector<128x384xbf16>, vector<8x384xf32> -> vector<8x384xf32>
    %226 = vector.extract_strided_slice %223 {offsets = [0, 0], sizes = [8, 128], strides = [1, 1]} : vector<8x384xf32> to vector<8x128xf32>
    %227 = vector.extract_strided_slice %225 {offsets = [0, 0], sizes = [8, 128], strides = [1, 1]} : vector<8x384xf32> to vector<8x128xf32>
    %228 = arith.addf %226, %227 : vector<8x128xf32>
    %229 = arith.negf %228 : vector<8x128xf32>
    %230 = math.exp %229 : vector<8x128xf32>
    %cst_66 = arith.constant 1.000000e+00 : f32
    %231 = vector.broadcast %cst_66 : f32 to vector<8x128xf32>
    %232 = arith.addf %231, %230 : vector<8x128xf32>
    %233 = arith.divf %231, %232 : vector<8x128xf32>
    %234 = vector.extract_strided_slice %223 {offsets = [0, 128], sizes = [8, 128], strides = [1, 1]} : vector<8x384xf32> to vector<8x128xf32>
    %235 = vector.extract_strided_slice %225 {offsets = [0, 128], sizes = [8, 128], strides = [1, 1]} : vector<8x384xf32> to vector<8x128xf32>
    %236 = arith.addf %234, %235 : vector<8x128xf32>
    %237 = arith.negf %236 : vector<8x128xf32>
    %238 = math.exp %237 : vector<8x128xf32>
    %cst_67 = arith.constant 1.000000e+00 : f32
    %239 = vector.broadcast %cst_67 : f32 to vector<8x128xf32>
    %240 = arith.addf %239, %238 : vector<8x128xf32>
    %241 = arith.divf %239, %240 : vector<8x128xf32>
    %242 = vector.extract_strided_slice %223 {offsets = [0, 256], sizes = [8, 128], strides = [1, 1]} : vector<8x384xf32> to vector<8x128xf32>
    %243 = vector.extract_strided_slice %225 {offsets = [0, 256], sizes = [8, 128], strides = [1, 1]} : vector<8x384xf32> to vector<8x128xf32>
    %244 = arith.addf %243, %8 : vector<8x128xf32>
    %245 = arith.mulf %233, %244 : vector<8x128xf32>
    %246 = arith.addf %242, %245 : vector<8x128xf32>
    %247 = math.tanh %246 : vector<8x128xf32>
    %248 = arith.subf %215, %247 : vector<8x128xf32>
    %249 = arith.mulf %241, %248 : vector<8x128xf32>
    %250 = arith.addf %247, %249 : vector<8x128xf32>
    %c0_68 = arith.constant 0 : index
    %251 = arith.index_cast %c6_i32 : i32 to index
    %c0_69 = arith.constant 0 : index
    %c0_70 = arith.constant 0 : index
    %252 = vector.load %arg5[%c0_68, %251, %c0_69, %c0_70] : memref<1x8x8x128xf32, #tpu.memory_space<vmem>>, vector<1x1x8x128xf32>
    %253 = vector.shape_cast %252 : vector<1x1x8x128xf32> to vector<8x128xf32>
    %254 = vector.shape_cast %250 : vector<8x128xf32> to vector<1x1x8x128xf32>
    tpu.vector_store %arg5[%c0_68, %251, %c0_69, %c0_70], %254 {strides = array<i32>} : memref<1x8x8x128xf32, #tpu.memory_space<vmem>>, vector<1x1x8x128xf32>,
    %c7_i32 = arith.constant 7 : i32
    %c0_71 = arith.constant 0 : index
    %255 = arith.index_cast %c7_i32 : i32 to index
    %c0_72 = arith.constant 0 : index
    %c0_73 = arith.constant 0 : index
    %256 = vector.load %arg2[%c0_71, %255, %c0_72, %c0_73] : memref<1x8x8x384xbf16, #tpu.memory_space<vmem>>, vector<1x1x8x384xbf16>
    %257 = vector.shape_cast %256 : vector<1x1x8x384xbf16> to vector<8x384xbf16>
    %258 = arith.extf %257 : vector<8x384xbf16> to vector<8x384xf32>
    %259 = arith.truncf %250 : vector<8x128xf32> to vector<8x128xbf16>
    %cst_74 = arith.constant dense<0.000000e+00> : vector<8x384xf32>
    %260 = tpu.matmul %259, %4, %cst_74 {dimension_numbers = #tpu.dot_dimension_numbers<[1], [0], [0], [1], [0, 0, 1, 1], [], []>} : vector<8x128xbf16>, vector<128x384xbf16>, vector<8x384xf32> -> vector<8x384xf32>
    %261 = vector.extract_strided_slice %258 {offsets = [0, 0], sizes = [8, 128], strides = [1, 1]} : vector<8x384xf32> to vector<8x128xf32>
    %262 = vector.extract_strided_slice %260 {offsets = [0, 0], sizes = [8, 128], strides = [1, 1]} : vector<8x384xf32> to vector<8x128xf32>
    %263 = arith.addf %261, %262 : vector<8x128xf32>
    %264 = arith.negf %263 : vector<8x128xf32>
    %265 = math.exp %264 : vector<8x128xf32>
    %cst_75 = arith.constant 1.000000e+00 : f32
    %266 = vector.broadcast %cst_75 : f32 to vector<8x128xf32>
    %267 = arith.addf %266, %265 : vector<8x128xf32>
    %268 = arith.divf %266, %267 : vector<8x128xf32>
    %269 = vector.extract_strided_slice %258 {offsets = [0, 128], sizes = [8, 128], strides = [1, 1]} : vector<8x384xf32> to vector<8x128xf32>
    %270 = vector.extract_strided_slice %260 {offsets = [0, 128], sizes = [8, 128], strides = [1, 1]} : vector<8x384xf32> to vector<8x128xf32>
    %271 = arith.addf %269, %270 : vector<8x128xf32>
    %272 = arith.negf %271 : vector<8x128xf32>
    %273 = math.exp %272 : vector<8x128xf32>
    %cst_76 = arith.constant 1.000000e+00 : f32
    %274 = vector.broadcast %cst_76 : f32 to vector<8x128xf32>
    %275 = arith.addf %274, %273 : vector<8x128xf32>
    %276 = arith.divf %274, %275 : vector<8x128xf32>
    %277 = vector.extract_strided_slice %258 {offsets = [0, 256], sizes = [8, 128], strides = [1, 1]} : vector<8x384xf32> to vector<8x128xf32>
    %278 = vector.extract_strided_slice %260 {offsets = [0, 256], sizes = [8, 128], strides = [1, 1]} : vector<8x384xf32> to vector<8x128xf32>
    %279 = arith.addf %278, %8 : vector<8x128xf32>
    %280 = arith.mulf %268, %279 : vector<8x128xf32>
    %281 = arith.addf %277, %280 : vector<8x128xf32>
    %282 = math.tanh %281 : vector<8x128xf32>
    %283 = arith.subf %250, %282 : vector<8x128xf32>
    %284 = arith.mulf %276, %283 : vector<8x128xf32>
    %285 = arith.addf %282, %284 : vector<8x128xf32>
    %c0_77 = arith.constant 0 : index
    %286 = arith.index_cast %c7_i32 : i32 to index
    %c0_78 = arith.constant 0 : index
    %c0_79 = arith.constant 0 : index
    %287 = vector.load %arg5[%c0_77, %286, %c0_78, %c0_79] : memref<1x8x8x128xf32, #tpu.memory_space<vmem>>, vector<1x1x8x128xf32>
    %288 = vector.shape_cast %287 : vector<1x1x8x128xf32> to vector<8x128xf32>
    %289 = vector.shape_cast %285 : vector<8x128xf32> to vector<1x1x8x128xf32>
    tpu.vector_store %arg5[%c0_77, %286, %c0_78, %c0_79], %289 {strides = array<i32>} : memref<1x8x8x128xf32, #tpu.memory_space<vmem>>, vector<1x1x8x128xf32>,
    %c8_i32 = arith.constant 8 : i32
    %c0_80 = arith.constant 0 : index
    %c0_81 = arith.constant 0 : index
    %290 = vector.load %arg6[%c0_80, %c0_81] : memref<8x128xf32, #tpu.memory_space<vmem>>, vector<8x128xf32>
    tpu.vector_store %arg6[%c0_80, %c0_81], %285 {strides = array<i32>} : memref<8x128xf32, #tpu.memory_space<vmem>>, vector<8x128xf32>,
    return
  }
  func.func @transform_0(%arg0: i32, %arg1: i32) -> (i32, i32, i32, i32) {
    %c0_i32 = arith.constant 0 : i32
    %c0_i32_0 = arith.constant 0 : i32
    %c0_i32_1 = arith.constant 0 : i32
    return %arg0, %arg1, %c0_i32, %c0_i32_0 : i32, i32, i32, i32
  }
  func.func @transform_1(%arg0: i32, %arg1: i32) -> (i32, i32, i32) {
    %c0_i32 = arith.constant 0 : i32
    %c0_i32_0 = arith.constant 0 : i32
    %c0_i32_1 = arith.constant 0 : i32
    return %arg0, %c0_i32, %c0_i32_0 : i32, i32, i32
  }
  func.func @transform_2(%arg0: i32, %arg1: i32) -> (i32, i32, i32) {
    %c0_i32 = arith.constant 0 : i32
    %c0_i32_0 = arith.constant 0 : i32
    %c0_i32_1 = arith.constant 0 : i32
    return %arg0, %c0_i32, %c0_i32_0 : i32, i32, i32
  }
  func.func @transform_3(%arg0: i32, %arg1: i32) -> (i32, i32, i32, i32) {
    %c0_i32 = arith.constant 0 : i32
    %c0_i32_0 = arith.constant 0 : i32
    %c0_i32_1 = arith.constant 0 : i32
    return %arg0, %arg1, %c0_i32, %c0_i32_0 : i32, i32, i32, i32
  }
}

</mosaic_0001>

<bundles_post_ra>
// kernel: tpu_custom_call.1
= control target key start
LH: loop header
LB: loop body
LE: loop exit
PB: predicated region body
PF: predicated region fallthrough
CT: control target
= control target key end

     0   :  { %8 = vsyncpa [#allocation4], 0  ;;  %s2822_s0 = inlined_call_operand.hbm [shape: bf16[2,8,8,384], index: 0, kind: input, shape index: {}]   ;;  %s2823_s1 = inlined_call_operand.hbm [shape: bf16[2,128,384], index: 1, kind: input, shape index: {}]   ;;  %s2824_s2 = inlined_call_operand.vmem [shape: f32[2,1,128], index: 2, kind: input, shape index: {}]   ;;  %s2825_s3 = inlined_call_operand.hbm [shape: f32[2,8,8,128], index: 3, kind: output, shape index: {}]  }
   0x1   :  { %10 = vsyncpa [#allocation4 + $0x1], 0 }
   0x2   :  { %11 = vsyncpa [#allocation7], 0 }
   0x3   :  { %13 = vsyncpa [#allocation7 + $0x1], 0 }
   0x4   :  { %14 = vsyncpa [#allocation5], 0 }
   0x5   :  { %16 = vsyncpa [#allocation5 + $0x1], 0  ;;  %s2148_s12 = smov 0   ;;  %s2150_s13 = smov 0  }
   0x6   :  { %s2152_s14 = smov 0   ;;  %s2154_s15 = smov 0  }
   0x7   :  { %s2156_s16 = smov 0   ;;  %s2158_s17 = smov 0  }
   0x8 LB: > { %s1460_s18 = sadd.s32 4294967295, %s2115_s17   ;;  %s1461_s19 = sadd.s32 4294967294, %s2115_s17   ;;  %s2115_s17 = sphi %s2158_s17, %s22_s17   ;;  %s2111_s16 = sphi %s2156_s16, %s2843_s16   ;;  %s2107_s15 = sphi %s2154_s15, %s2842_s15   ;;  %s2103_s14 = sphi %s2152_s14, %s2841_s14   ;;  %s2099_s13 = sphi %s2150_s13, %s2840_s13   ;;  %s2095_s12 = sphi %s2148_s12, %s2839_s12  }
   0x9   : > { %s34_s20 = sadd.s32 1, %s2111_s16  ;;  %s43_s21 = sadd.s32 1, %s2103_s14 }
   0xa   : > { %p36_p0 = scmp.ge.s32.totalorder %s34_s20, 2  ;;  %p50_p1 = scmp.ne.s32.totalorder %s2103_s14, %s2099_s13 }
   0xb   : > { %p51_p2 = scmp.eq.s32.totalorder %s2115_s17, 0  ;;  %p56_p3 = scmp.ne.s32.totalorder %s2099_s13, %s2095_s12 }
   0xc   : > { %s2845_s20 = smov (%p36_p0, %s34_s20), 0  ;;  %p57_p5 = scmp.eq.s32.totalorder %s1460_s18, 0 }
   0xd   : > { %p2189_p4 = por %p51_p2, %p50_p1  ;;  %s38_s23 = ssub.s32 %s2111_s16, %s2845_s20 }
   0xe   : > { %p134_p6 = scmp.eq.s32.totalorder %s1460_s18, 1  ;;  %p41_p7 = scmp.eq.s32.totalorder %s38_s23, 0 }
   0xf   : > { %p2195_p8 = por %p57_p5, %p56_p3  ;;  %p140_p10 = scmp.eq.s32.totalorder %s1461_s19, 1 }
  0x10   : > { %p2199_p9 = por %p134_p6, %p50_p1  ;;  %p1791_p13 = scmp.lt.s32.totalorder %s2115_s17, 2 }
  0x11   : > { %s2829_s24 = scalar_select %p2195_p8, 1, 0 }
  0x12   : > { %s2830_s25 = scalar_select %p2199_p9, 1, 0 }
  0x13   : > { %s2204_s26 = scalar_select %p41_p7, %s2103_s14, %s43_s21  }
  0x14   : > { %p2206_p11 = por %p140_p10, %p56_p3  ;;  %s2213_s28 = sand.u32 1, %s2103_s14  }
  0x15   : > { %s1768_s29 = smul.u32 96, %s2213_s28  ;;  %p2219_p0 = pnand %p1791_p13, %p2189_p4 }
  0x16   : > { %s2831_s27 = scalar_select %p2206_p11, 1, 0 }
  0x17   : > { %s1769_s30 = smul.u32 1536, %s2111_s16  ;;  %s164_s8 = scalar_lea.vmem [#allocation3], %s1768_s29 }
  0x18   : > { %s174_s9 = sshll.u32 %s164_s8, 4  ;;  %s161_s10 = scalar_lea.sflag [#allocation4], %s2213_s28  ;;  %s2228_s9 = int_to_ptr.vmem [resolvable:$true] %s174_s9 }
  0x19   : > { %s2226_s7 = scalar_lea.hbm %s2822_s0, %s1769_s30  ;;  %p1971_p3 = pneg %p2219_p0 }
  0x1a   : > { %s1969_s11 = scalar_lea.hbm %s2226_s7, 1536  ;;  %s1974_s21 = scalar_lea.hbm %s2822_s0, 3072 }
  0x1b   : > { %p1970_p2 = scmp.ne.s32.totalorder %s2226_s7, %s1969_s11  ;;  %p1975_p6 = scmp.lt.u32.totalorder %s2226_s7, %s2822_s0 }
  0x1c   : > { %p1976_p7 = scmp.lt.u32.totalorder %s1974_s21, %s1969_s11  ;;  %p1978_p13 = scmp.lt.u32.totalorder %s1969_s11, %s2226_s7 }
  0x1d   : > { %p1972_p4 = pnand %p1971_p3, %p1970_p2 }
  0x1e   : > { %p1977_p10 = por %p1976_p7, %p1975_p6 }
  0x1f   : > { %p1973_p5 = pneg %p1972_p4 }
  0x20   : > { %p1979_p12 = por %p1978_p13, %p1977_p10 }
  0x22   : > { %p1980_p1 = pnand %p1979_p12, %p1973_p5 }
  0x24   : > { %1983 = shalt.err (!%p1980_p1)
}
  0x25   : > { %s1984_s29 = scalar_lea.vmem %s2228_s9, 1536  ;;  %s2117_s30 = smov [#allocation3]  }
  0x26   : > { %p1985_p2 = scmp.ne.s32.totalorder %s2228_s9, %s1984_s29  ;;  %s1989_s5 = sshll.u32 %s2117_s30, 4  ;;  %s1990_s5 = int_to_ptr.vmem [resolvable:$false] %s1989_s5 }
  0x27   : > { %s1991_s6 = scalar_lea.vmem %s1990_s5, 3072  ;;  %p1992_p9 = scmp.lt.s32.totalorder %s2228_s9, %s1990_s5 }
  0x28   : > { %p1987_p4 = pnand %p1985_p2, %p1971_p3  ;;  %p1993_p6 = scmp.lt.s32.totalorder %s1991_s6, %s1984_s29 }
  0x2a   : > { %p1988_p11 = pneg %p1987_p4  ;;  %p1994_p7 = por %p1993_p6, %p1992_p9 }
  0x2c   : > { %p1995_p10 = pnand %p1994_p7, %p1988_p11 }
  0x2e   : > { %1998 = shalt.err (!%p1995_p10)
}
  0x2f   : > { %s2118_s8 = smov 192   ;;  %s2119_s11 = smov 12  }
  0x30   : > { %1783 = dma.hbm_to_vmem [thread:$0]  (!%p2219_p0), %s2226_s7, 1536, %s2228_s9, %s161_s10, %s2118_s8, %s2118_s8, %s2119_s11  }
  0x31   : > { %p209_p9 = scmp.lt.s32.totalorder %s2115_s17, 3  ;;  %s1770_s18 = smul.u32 192, %s2213_s28 }
  0x32   : > { %p2833_p11 = scmp.ge.s32.totalorder %s2115_s17, 1  ;;  %s1771_s21 = smul.u32 3072, %s2111_s16 }
  0x33   : > { %s188_s30 = scalar_lea.vmem [#allocation6], %s1770_s18  ;;  %s185_s7 = scalar_lea.sflag [#allocation7], %s2213_s28 }
  0x34   : > { %p2266_p12 = pnand %p2833_p11, %p209_p9  ;;  %s2274_s29 = scalar_lea.hbm %s2823_s1, %s1771_s21 }
  0x35   : > { %s195_s5 = sshll.u32 %s188_s30, 4  ;;  %s1999_s9 = scalar_lea.hbm %s2274_s29, 3072  ;;  %s2276_s5 = int_to_ptr.vmem [resolvable:$true] %s195_s5 }
  0x36   : > { %p2000_p1 = scmp.ne.s32.totalorder %s2274_s29, %s1999_s9  ;;  %s2004_s21 = scalar_lea.hbm %s2823_s1, 6144 }
  0x37   : > { %p2005_p2 = scmp.lt.u32.totalorder %s2274_s29, %s2823_s1  ;;  %p2006_p4 = scmp.lt.u32.totalorder %s2004_s21, %s1999_s9 }
  0x38   : > { %p2002_p5 = pnand %p2000_p1, %p1971_p3  ;;  %p2008_p7 = scmp.lt.u32.totalorder %s1999_s9, %s2274_s29 }
  0x39   : > { %p2007_p6 = por %p2006_p4, %p2005_p2 }
  0x3a   : > { %p2003_p13 = pneg %p2002_p5 }
  0x3b   : > { %p2009_p10 = por %p2008_p7, %p2007_p6 }
  0x3d   : > { %p2010_p9 = pnand %p2009_p10, %p2003_p13 }
  0x3f   : > { %2013 = shalt.err (!%p2010_p9)
}
  0x40   : > { %s2014_s18 = scalar_lea.vmem %s2276_s5, 3072  ;;  %s2120_s30 = smov [#allocation6]  }
  0x41   : > { %p2015_p11 = scmp.ne.s32.totalorder %s2276_s5, %s2014_s18  ;;  %s2019_s10 = sshll.u32 %s2120_s30, 4  ;;  %s2020_s10 = int_to_ptr.vmem [resolvable:$false] %s2019_s10 }
  0x42   : > { %s2021_s6 = scalar_lea.vmem %s2020_s10, 6144  ;;  %p2022_p8 = scmp.lt.s32.totalorder %s2276_s5, %s2020_s10 }
  0x43   : > { %p2017_p1 = pnand %p2015_p11, %p1971_p3  ;;  %p2023_p2 = scmp.lt.s32.totalorder %s2021_s6, %s2014_s18 }
  0x45   : > { %p2018_p5 = pneg %p2017_p1  ;;  %p2024_p4 = por %p2023_p2, %p2022_p8 }
  0x47   : > { %p2025_p6 = pnand %p2024_p4, %p2018_p5 }
  0x49   : > { %2028 = shalt.err (!%p2025_p6)
}
  0x4a   : > { %1786 = dma.hbm_to_vmem [thread:$0]  (!%p2219_p0), %s2274_s29, 3072, %s2276_s5, %s185_s7, %s2118_s8, %s2118_s8, %s2119_s11  }
  0x4b   : > { %213 = sbr.rel (%p2266_p12) target bundleno = 2238 (0x8be), region = 32  ;;  %s2310_s9 = sand.u32 (!%p2266_p12), 1, %s2099_s13  }
  0x4c   : > { %s1772_s21 = smul.u32 (!%p2266_p12), 96, %s2310_s9  ;;  %s216_s22 = scalar_lea.sflag (!%p2266_p12), [#allocation4], %s2310_s9 }
  0x4d   : > { %p2835_p8 = scmp.ne.s32.totalorder (!%p2266_p12), %s2829_s24, 0 }
  0x4e   : > { %s2314_s4 = scalar_lea.vmem (!%p2266_p12), [#allocation3], %s1772_s21 }
  0x52   : > { %2082 = dma.done.wait (%p2835_p8), %s216_s22, 1536  }
  0x53   : > { %2084 = vsyncadd (%p2835_p8), %s216_s22, 4294965760  ;;  %s1773_s28 = smul.u32 192, %s2310_s9  ;;  %s225_s8 = scalar_lea.sflag [#allocation7], %s2310_s9 }
  0x55   : > { %s2322_s11 = scalar_lea.vmem [#allocation6], %s1773_s28 }
  0x56   : > { %2086 = dma.done.wait (%p2835_p8), %s225_s8, 3072  }
  0x57   : > { %2088 = vsyncadd (%p2835_p8), %s225_s8, 4294964224  ;;  %v2121_v0 = vmov 0.0   ;;  %v2122_v1 = vmov 0   ;;  %vm2123_vm0 = vmmov 0   ;;  %v2333_v2 = vld [vmem:[%s2322_s11 + $0x4] ss:$12 sps:$4 sm:$0xff]  }
  0x58   : > { %1608 = vmatprep.subr.bf16.mxu1 %v2121_v0  ;;  %476 = vmatprep.mubr.bf16.mxu0 %v2122_v1  ;;  %v2336_v3 = vld [vmem:[%s2322_s11] ss:$12 sps:$4 sm:$0xff]   ;;  %v2340_v4 = vld [vmem:[%s2322_s11 + $0x1c] ss:$12 sps:$4 sm:$0xff]   ;;  %v2344_v5 = vld [vmem:[%s2322_s11 + $0x18] ss:$12 sps:$4 sm:$0xff]  }
  0x59   : > { %1624 = vmatprep.mubr.msk.bf16.mxu1 %vm2123_vm0, %v2121_v0  ;;  %444 = vmatprep.subr.bf16.mxu0 %v2333_v2  ;;  %v2348_v6 = vld [vmem:[%s2322_s11 + $0x34] ss:$12 sps:$4 sm:$0xff]   ;;  %v2352_v7 = vld [vmem:[%s2322_s11 + $0x30] ss:$12 sps:$4 sm:$0xff]   ;;  %v2356_v8 = vld [vmem:[%s2322_s11 + $0x4c] ss:$12 sps:$4 sm:$0xff]  }
  0x5a   : > { %445 = vmatpush1.bf16.msra.mxu0 %v2336_v3  ;;  %v2359_v9 = vld [vmem:[%s2322_s11 + $0x8] ss:$12 sps:$4 sm:$0xff]   ;;  %v2368_v11 = vld [vmem:[%s2322_s11 + $0x64] ss:$12 sps:$4 sm:$0xff]   ;;  %v2372_v12 = vld [vmem:[%s2322_s11 + $0x20] ss:$12 sps:$4 sm:$0xff]  }
  0x5b   : > { %446 = vmatprep.subr.bf16.mxu0 %v2340_v4  ;;  %v2363_v10 = vld [vmem:[%s2322_s11 + $0x48] ss:$12 sps:$4 sm:$0xff]   ;;  %1609 = vmatpush3.bf16.msra.mxu1 %v2359_v9  ;;  %v2375_v13 = vld [vmem:[%s2322_s11 + $0x60] ss:$12 sps:$4 sm:$0xff]   ;;  %v2380_v14 = vld [vmem:[%s2322_s11 + $0x38] ss:$12 sps:$4 sm:$0xff]  }
  0x5c   : > { %1610 = vmatprep.subr.bf16.mxu1 %v2121_v0  ;;  %v2384_v15 = vld [vmem:[%s2322_s11 + $0x7c] ss:$12 sps:$4 sm:$0xff]   ;;  %v2389_v16 = vld [vmem:[%s2322_s11 + $0x78] ss:$12 sps:$4 sm:$0xff]   ;;  %v2397_v18 = vld [vmem:[%s2322_s11 + $0x94] ss:$12 sps:$4 sm:$0xff]  }
  0x5d   : > { %v2393_v17 = vld [vmem:[%s2322_s11 + $0x50] ss:$12 sps:$4 sm:$0xff]   ;;  %v2406_v20 = vld [vmem:[%s2322_s11 + $0x68] ss:$12 sps:$4 sm:$0xff]   ;;  %v2410_v21 = vld [vmem:[%s2322_s11 + $0xac] ss:$12 sps:$4 sm:$0xff]  }
  0x5e   : > { %447 = vmatpush1.bf16.msra.mxu0 %v2344_v5  ;;  %v2402_v19 = vld [vmem:[%s2322_s11 + $0x90] ss:$12 sps:$4 sm:$0xff]   ;;  %v2415_v22 = vld [vmem:[%s2322_s11 + $0xa8] ss:$12 sps:$4 sm:$0xff]   ;;  %v2419_v23 = vld [vmem:[%s2322_s11 + $0x80] ss:$12 sps:$4 sm:$0xff]  }
  0x5f   : > { %448 = vmatprep.subr.bf16.mxu0 %v2348_v6  ;;  %1611 = vmatpush3.bf16.msra.mxu1 %v2372_v12  ;;  %v2426_v24 = vld [vmem:[%s2322_s11 + $0x98] ss:$12 sps:$4 sm:$0xff]   ;;  %v2124_v25 = vmov 0.0|0.0   ;;  %v2432_v26 = vld [vmem:[%s2322_s11 + $0xb0] ss:$12 sps:$4 sm:$0xff]   ;;  %p260_p0 = scmp.lt.s32.totalorder %s2107_s15, 1 }
  0x60   : > { %1612 = vmatprep.subr.bf16.mxu1 %v2121_v0  ;;  %v310_v27 = vld [vmem:[%s2314_s4] sm:$0xff]  ;;  %v2481_v45 = vld [vmem:[%s2314_s4 + $0x8] ss:$12 sps:$4 sm:$0xff]   ;;  %s1467_s7 = sshll.u32 %s2310_s9, 6  ;;  %v1495_v59 = vld [vmem:[%s2314_s4 + $0xc] sm:$0xff]  ;;  %s1535_s18 = sshll.u32 %s2107_s15, 10 }
  0x61   : > { %v312_v28 = vunpack.c.l.bf16 %v310_v27  ;;  %v313_v35 = vunpack.c.h.bf16 %v310_v27  ;;  %s261_s24 = scalar_select %p260_p0, %s2107_s15, 1  ;;  %v314_v48 = vunpack.c.l.bf16 %v2481_v45  ;;  %v550_v60 = vunpack.c.l.bf16 %v1495_v59 }
  0x62   : > { %449 = vmatpush1.bf16.msra.mxu0 %v2352_v7  ;;  %s2488_s23 = scalar_lea.vmem [#allocation8], %s1467_s7  ;;  %s2770_s21 = scalar_lea.hbm %s2825_s3, %s1535_s18 }
  0x63   : > { %450 = vmatprep.subr.bf16.mxu0 %v2356_v8  ;;  %1613 = vmatpush3.bf16.msra.mxu1 %v2380_v14  ;;  %s262_s5 = scalar_lea.vmem %s2824_s2, %s261_s24  ;;  %s1341_s30 = sshll.u32 %s2488_s23, 4  ;;  %s2772_s30 = int_to_ptr.vmem [resolvable:$true] %s1341_s30 }
  0x64   : > { %1614 = vmatprep.subr.bf16.mxu1 %v2121_v0  ;;  %v2478_v44 = vld [vmem:[%s262_s5] ss:$0 sm:$0xff]  ;;  %s1326_s22 = scalar_lea.sflag [#allocation5], %s2310_s9  ;;  %p2836_p12 = scmp.ne.s32.totalorder %s2830_s25, 0 }
  0x65   : > { %s2125_s15 = smov [#allocation8]  }
  0x66   : > { %451 = vmatpush1.bf16.msra.mxu0 %v2363_v10  ;;  %s2033_s28 = sshll.u32 %s2125_s15, 4  ;;  %s2034_s28 = int_to_ptr.vmem [resolvable:$false] %s2033_s28 }
  0x67   : > { %452 = vmatprep.subr.bf16.mxu0 %v2368_v11  ;;  %1615 = vmatpush3.bf16.msra.mxu1 %v2393_v17  ;;  %s2035_s8 = scalar_lea.vmem %s2034_s28, 2048  ;;  %p2036_p10 = scmp.lt.s32.totalorder %s2772_s30, %s2034_s28 }
  0x68   : > { %1616 = vmatprep.subr.bf16.mxu1 %v2121_v0 }
  0x6a   : > { %453 = vmatpush1.bf16.msra.mxu0 %v2375_v13 }
  0x6b   : > { %454 = vmatprep.subr.bf16.mxu0 %v2384_v15  ;;  %1617 = vmatpush3.bf16.msra.mxu1 %v2406_v20 }
  0x6c   : > { %1618 = vmatprep.subr.bf16.mxu1 %v2121_v0 }
  0x6e   : > { %455 = vmatpush1.bf16.msra.mxu0 %v2389_v16 }
  0x6f   : > { %456 = vmatprep.subr.bf16.mxu0 %v2397_v18  ;;  %1619 = vmatpush3.bf16.msra.mxu1 %v2419_v23 }
  0x70   : > { %1620 = vmatprep.subr.bf16.mxu1 %v2121_v0 }
  0x72   : > { %457 = vmatpush1.bf16.msra.mxu0 %v2402_v19 }
  0x73   : > { %458 = vmatprep.subr.bf16.mxu0 %v2410_v21  ;;  %1621 = vmatpush3.bf16.msra.mxu1 %v2426_v24 }
  0x74   : > { %1622 = vmatprep.subr.bf16.mxu1 %v2121_v0 }
  0x76   : > { %459 = vmatpush1.bf16.msra.mxu0 %v2415_v22 }
  0x77   : > { %554 = vmatprep.subr.bf16.mxu0 %v2333_v2  ;;  %1623 = vmatpush3.bf16.msra.mxu1 %v2432_v26 }
  0x78   : > { %1628 = vmatprep.subr.bf16.mxu1 %v2121_v0 }
  0x79   : > { %477 = vmatmul.mubr.bf16.vlgmr.msra.gmra.mrb[0].mxu0 %v2124_v25 }
  0x7a   : > { %555 = vmatpush1.bf16.msra.mxu0 %v2336_v3  ;;  %586 = vmatprep.mubr.bf16.mxu0 %v2122_v1 }
  0x7b   : > { %556 = vmatprep.subr.bf16.mxu0 %v2340_v4  ;;  %1625 = vmatmul.mubr.bf16.vlgmr.msra.gmra.mrb[0].mxu1 %v2124_v25 }
  0x7c   : > { %1629 = vmatpush3.bf16.msra.mxu1 %v2359_v9  ;;  %1644 = vmatprep.mubr.msk.bf16.mxu1 %vm2123_vm0, %v2121_v0 }
  0x7d   : > { %1630 = vmatprep.subr.bf16.mxu1 %v2121_v0 }
  0x7e   : > { %557 = vmatpush1.bf16.msra.mxu0 %v2344_v5 }
  0x7f   : > { %558 = vmatprep.subr.bf16.mxu0 %v2348_v6 }
  0x80   : > { %1631 = vmatpush3.bf16.msra.mxu1 %v2372_v12 }
  0x81   : > { %1632 = vmatprep.subr.bf16.mxu1 %v2121_v0 }
  0x82   : > { %559 = vmatpush1.bf16.msra.mxu0 %v2352_v7 }
  0x83   : > { %560 = vmatprep.subr.bf16.mxu0 %v2356_v8 }
  0x84   : > { %1633 = vmatpush3.bf16.msra.mxu1 %v2380_v14 }
  0x85   : > { %1634 = vmatprep.subr.bf16.mxu1 %v2121_v0 }
  0x86   : > { %561 = vmatpush1.bf16.msra.mxu0 %v2363_v10 }
  0x87   : > { %562 = vmatprep.subr.bf16.mxu0 %v2368_v11 }
  0x88   : > { %1635 = vmatpush3.bf16.msra.mxu1 %v2393_v17 }
  0x89   : > { %1636 = vmatprep.subr.bf16.mxu1 %v2121_v0 }
  0x8a   : > { %563 = vmatpush1.bf16.msra.mxu0 %v2375_v13 }
  0x8b   : > { %564 = vmatprep.subr.bf16.mxu0 %v2384_v15 }
  0x8c   : > { %1637 = vmatpush3.bf16.msra.mxu1 %v2406_v20 }
  0x8d   : > { %1638 = vmatprep.subr.bf16.mxu1 %v2121_v0 }
  0x8e   : > { %565 = vmatpush1.bf16.msra.mxu0 %v2389_v16 }
  0x8f   : > { %566 = vmatprep.subr.bf16.mxu0 %v2397_v18 }
  0x90   : > { %1639 = vmatpush3.bf16.msra.mxu1 %v2419_v23 }
  0x91   : > { %1640 = vmatprep.subr.bf16.mxu1 %v2121_v0 }
  0x92   : > { %567 = vmatpush1.bf16.msra.mxu0 %v2402_v19 }
  0x93   : > { %568 = vmatprep.subr.bf16.mxu0 %v2410_v21 }
  0x94   : > { %1641 = vmatpush3.bf16.msra.mxu1 %v2426_v24 }
  0x95   : > { %1642 = vmatprep.subr.bf16.mxu1 %v2121_v0 }
  0x96   : > { %569 = vmatpush1.bf16.msra.mxu0 %v2415_v22 }
  0x97   : > { %665 = vmatprep.subr.bf16.mxu0 %v2333_v2 }
  0x98   : > { %1643 = vmatpush3.bf16.msra.mxu1 %v2432_v26 }
  0x99   : > { %1648 = vmatprep.subr.bf16.mxu1 %v2121_v0 }
 0x14c   : > { %v478_v29 = vpop.f32.mrb[0].mxu0 }
 0x14d   : > { %v525_v30 = vadd.f32 %v478_v29, %v312_v28  ;;  %v480_v31 = vpop.f32.mrb[1].mxu0 }
 0x14e   : > { %v482_v32 = vpop.f32.mrb[2].mxu0  ;;  %v519_v36 = vpop.f32.mrb[0].mxu1  ;;  %v532_v37 = vadd.f32 %v480_v31, %v313_v35 }
 0x14f   : > { %v1493_v33 = vmul.f32 -1.442695, %v525_v30  ;;  %v483_v34 = vpop.f32.mrb[3].mxu0  ;;  %v1626_v38 = vpop.f32.mrb[1].mxu1  ;;  %v539_v46 = vadd.f32 %v2478_v44, %v519_v36 }
 0x150   : > { %v522_v39 = vpop.f32.mrb[2].mxu1  ;;  %v1494_v41 = vmul.f32 -1.442695, %v532_v37 }
 0x151   : > { %1881 = vpow2.f32 %v1493_v33  ;;  %v1627_v40 = vpop.f32.mrb[3].mxu1  ;;  %v551_v33 = vunpack.c.h.bf16 %v1495_v59  ;;  %v552_v39 = vunpack.c.h.bf16 %v2481_v45 }
 0x152   : > { %1883 = vpow2.f32 %v1494_v41 }
 0x15b   : > { %v1882_v42 = vpop.eup %1881 }
 0x15c   : > { %v529_v43 = vadd.f32 1.0, %v1882_v42  ;;  %v1884_v47 = vpop.eup %1883 }
 0x15d   : > { %v536_v51 = vadd.f32 1.0, %v1884_v47 }
 0x15e   : > { %1885 = vrcp.f32 %v529_v43 }
 0x168   : > { %v1886_v49 = vpop.eup %1885 }
 0x169   : > { %v540_v50 = vmul.f32 %v1886_v49, %v539_v46 }
 0x16b   : > { %v541_v52 = vadd.f32 %v540_v50, %v314_v48 }
 0x16d   : > { %1887 = vtanh.f32 %v541_v52  ;;  %v1500_v52 = vld [vmem:[%s2314_s4 + $0x18] sm:$0xff] }
 0x16e   : > { %1889 = vrcp.f32 %v536_v51 }
 0x177   : > { %v1888_v53 = vpop.eup %1887 }
 0x178   : > { %v543_v54 = vsub.f32 0.0, %v1888_v53  ;;  %v1890_v55 = vpop.eup %1889 }
 0x17a   : > { %v544_v56 = vmul.f32 %v1890_v55, %v543_v54 }
 0x17c   : > { %v2486_v57 = vadd.f32 %v1888_v53, %v544_v56  ;;  %v661_v53 = vunpack.c.l.bf16 %v1500_v52 }
 0x17e   : > { %546 = vst [vmem:[%s2488_s23] sm:$0xff] %v2486_v57  ;;  %v553_v58 = vpack.c.bf16 %v2486_v57, %v2486_v57 }
 0x180   : > { %587 = vmatmul.mubr.bf16.vlgmr.msra.gmra.mrb[4].mxu0 %v553_v58  ;;  %1645 = vmatmul.mubr.bf16.vlgmr.msra.gmra.mrb[4].mxu1 %v553_v58 }
 0x181   : > { %666 = vmatpush1.bf16.msra.mxu0 %v2336_v3  ;;  %1649 = vmatpush3.bf16.msra.mxu1 %v2359_v9 }
 0x182   : > { %667 = vmatprep.subr.bf16.mxu0 %v2340_v4  ;;  %1650 = vmatprep.subr.bf16.mxu1 %v2121_v0 }
 0x183   : > { %697 = vmatprep.mubr.bf16.mxu0 %v2122_v1  ;;  %1664 = vmatprep.mubr.msk.bf16.mxu1 %vm2123_vm0, %v2121_v0 }
 0x185   : > { %668 = vmatpush1.bf16.msra.mxu0 %v2344_v5  ;;  %1651 = vmatpush3.bf16.msra.mxu1 %v2372_v12 }
 0x186   : > { %669 = vmatprep.subr.bf16.mxu0 %v2348_v6  ;;  %1652 = vmatprep.subr.bf16.mxu1 %v2121_v0 }
 0x189   : > { %670 = vmatpush1.bf16.msra.mxu0 %v2352_v7  ;;  %1653 = vmatpush3.bf16.msra.mxu1 %v2380_v14 }
 0x18a   : > { %671 = vmatprep.subr.bf16.mxu0 %v2356_v8  ;;  %1654 = vmatprep.subr.bf16.mxu1 %v2121_v0 }
 0x18d   : > { %672 = vmatpush1.bf16.msra.mxu0 %v2363_v10  ;;  %1655 = vmatpush3.bf16.msra.mxu1 %v2393_v17 }
 0x18e   : > { %673 = vmatprep.subr.bf16.mxu0 %v2368_v11  ;;  %1656 = vmatprep.subr.bf16.mxu1 %v2121_v0 }
 0x191   : > { %674 = vmatpush1.bf16.msra.mxu0 %v2375_v13  ;;  %1657 = vmatpush3.bf16.msra.mxu1 %v2406_v20 }
 0x192   : > { %675 = vmatprep.subr.bf16.mxu0 %v2384_v15  ;;  %1658 = vmatprep.subr.bf16.mxu1 %v2121_v0 }
 0x195   : > { %676 = vmatpush1.bf16.msra.mxu0 %v2389_v16  ;;  %1659 = vmatpush3.bf16.msra.mxu1 %v2419_v23 }
 0x196   : > { %677 = vmatprep.subr.bf16.mxu0 %v2397_v18  ;;  %1660 = vmatprep.subr.bf16.mxu1 %v2121_v0 }
 0x199   : > { %678 = vmatpush1.bf16.msra.mxu0 %v2402_v19  ;;  %1661 = vmatpush3.bf16.msra.mxu1 %v2426_v24 }
 0x19a   : > { %679 = vmatprep.subr.bf16.mxu0 %v2410_v21  ;;  %1662 = vmatprep.subr.bf16.mxu1 %v2121_v0 }
 0x19d   : > { %680 = vmatpush1.bf16.msra.mxu0 %v2415_v22  ;;  %1663 = vmatpush3.bf16.msra.mxu1 %v2432_v26 }
 0x19e   : > { %776 = vmatprep.subr.bf16.mxu0 %v2333_v2  ;;  %1668 = vmatprep.subr.bf16.mxu1 %v2121_v0 }
 0x253   : > { %v588_v61 = vpop.f32.mrb[4].mxu0  ;;  %v629_v62 = vpop.f32.mrb[4].mxu1 }
 0x254   : > { %v635_v63 = vadd.f32 %v588_v61, %v550_v60  ;;  %v590_v25 = vpop.f32.mrb[5].mxu0  ;;  %v1646_v27 = vpop.f32.mrb[5].mxu1  ;;  %v649_v40 = vadd.f32 %v2478_v44, %v629_v62 }
 0x255   : > { %v592_v28 = vpop.f32.mrb[6].mxu0  ;;  %v632_v29 = vpop.f32.mrb[6].mxu1  ;;  %v642_v34 = vadd.f32 %v590_v25, %v551_v33  ;;  %v662_v25 = vunpack.c.h.bf16 %v1500_v52 }
 0x256   : > { %v1497_v30 = vmul.f32 -1.442695, %v635_v63  ;;  %v593_v31 = vpop.f32.mrb[7].mxu0  ;;  %v1647_v32 = vpop.f32.mrb[7].mxu1 }
 0x257   : > { %v1498_v35 = vmul.f32 -1.442695, %v642_v34  ;;  %v2576_v31 = vld [vmem:[%s2314_s4 + $0x20] ss:$12 sps:$4 sm:$0xff]  }
 0x258   : > { %1891 = vpow2.f32 %v1497_v30  ;;  %v663_v33 = vunpack.c.l.bf16 %v2576_v31 }
 0x259   : > { %1893 = vpow2.f32 %v1498_v35 }
 0x262   : > { %v1892_v36 = vpop.eup %1891 }
 0x263   : > { %v639_v37 = vadd.f32 1.0, %v1892_v36  ;;  %v1894_v38 = vpop.eup %1893 }
 0x264   : > { %v646_v46 = vadd.f32 1.0, %v1894_v38 }
 0x265   : > { %1895 = vrcp.f32 %v639_v37 }
 0x26f   : > { %v1896_v41 = vpop.eup %1895 }
 0x270   : > { %v650_v42 = vmul.f32 %v1896_v41, %v649_v40 }
 0x272   : > { %v651_v43 = vadd.f32 %v650_v42, %v552_v39 }
 0x274   : > { %1897 = vtanh.f32 %v651_v43 }
 0x275   : > { %1899 = vrcp.f32 %v646_v46 }
 0x27e   : > { %v1898_v47 = vpop.eup %1897 }
 0x27f   : > { %v653_v48 = vsub.f32 %v2486_v57, %v1898_v47  ;;  %v1900_v49 = vpop.eup %1899 }
 0x281   : > { %v654_v50 = vmul.f32 %v1900_v49, %v653_v48 }
 0x283   : > { %v2533_v51 = vadd.f32 %v1898_v47, %v654_v50  ;;  %v1505_v47 = vld [vmem:[%s2314_s4 + $0x24] sm:$0xff] }
 0x284   : > { %v772_v48 = vunpack.c.l.bf16 %v1505_v47 }
 0x285   : > { %1499 = vst [vmem:[%s2488_s23 + $0x8] sm:$0xff] %v2533_v51  ;;  %v664_v45 = vpack.c.bf16 %v2533_v51, %v2533_v51 }
 0x287   : > { %698 = vmatmul.mubr.bf16.vlgmr.msra.gmra.mrb[8].mxu0 %v664_v45  ;;  %1665 = vmatmul.mubr.bf16.vlgmr.msra.gmra.mrb[8].mxu1 %v664_v45 }
 0x288   : > { %777 = vmatpush1.bf16.msra.mxu0 %v2336_v3  ;;  %1669 = vmatpush3.bf16.msra.mxu1 %v2359_v9 }
 0x289   : > { %778 = vmatprep.subr.bf16.mxu0 %v2340_v4  ;;  %1670 = vmatprep.subr.bf16.mxu1 %v2121_v0 }
 0x28a   : > { %808 = vmatprep.mubr.bf16.mxu0 %v2122_v1  ;;  %1684 = vmatprep.mubr.msk.bf16.mxu1 %vm2123_vm0, %v2121_v0 }
 0x28c   : > { %779 = vmatpush1.bf16.msra.mxu0 %v2344_v5  ;;  %1671 = vmatpush3.bf16.msra.mxu1 %v2372_v12 }
 0x28d   : > { %780 = vmatprep.subr.bf16.mxu0 %v2348_v6  ;;  %1672 = vmatprep.subr.bf16.mxu1 %v2121_v0 }
 0x290   : > { %781 = vmatpush1.bf16.msra.mxu0 %v2352_v7  ;;  %1673 = vmatpush3.bf16.msra.mxu1 %v2380_v14 }
 0x291   : > { %782 = vmatprep.subr.bf16.mxu0 %v2356_v8  ;;  %1674 = vmatprep.subr.bf16.mxu1 %v2121_v0 }
 0x294   : > { %783 = vmatpush1.bf16.msra.mxu0 %v2363_v10  ;;  %1675 = vmatpush3.bf16.msra.mxu1 %v2393_v17 }
 0x295   : > { %784 = vmatprep.subr.bf16.mxu0 %v2368_v11  ;;  %1676 = vmatprep.subr.bf16.mxu1 %v2121_v0 }
 0x298   : > { %785 = vmatpush1.bf16.msra.mxu0 %v2375_v13  ;;  %1677 = vmatpush3.bf16.msra.mxu1 %v2406_v20 }
 0x299   : > { %786 = vmatprep.subr.bf16.mxu0 %v2384_v15  ;;  %1678 = vmatprep.subr.bf16.mxu1 %v2121_v0 }
 0x29c   : > { %787 = vmatpush1.bf16.msra.mxu0 %v2389_v16  ;;  %1679 = vmatpush3.bf16.msra.mxu1 %v2419_v23 }
 0x29d   : > { %788 = vmatprep.subr.bf16.mxu0 %v2397_v18  ;;  %1680 = vmatprep.subr.bf16.mxu1 %v2121_v0 }
 0x2a0   : > { %789 = vmatpush1.bf16.msra.mxu0 %v2402_v19  ;;  %1681 = vmatpush3.bf16.msra.mxu1 %v2426_v24 }
 0x2a1   : > { %790 = vmatprep.subr.bf16.mxu0 %v2410_v21  ;;  %1682 = vmatprep.subr.bf16.mxu1 %v2121_v0 }
 0x2a4   : > { %791 = vmatpush1.bf16.msra.mxu0 %v2415_v22  ;;  %1683 = vmatpush3.bf16.msra.mxu1 %v2432_v26 }
 0x2a5   : > { %887 = vmatprep.subr.bf16.mxu0 %v2333_v2  ;;  %1688 = vmatprep.subr.bf16.mxu1 %v2121_v0 }
 0x35a   : > { %v699_v54 = vpop.f32.mrb[8].mxu0  ;;  %v740_v55 = vpop.f32.mrb[8].mxu1 }
 0x35b   : > { %v746_v56 = vadd.f32 %v699_v54, %v661_v53  ;;  %v701_v57 = vpop.f32.mrb[9].mxu0  ;;  %v1666_v58 = vpop.f32.mrb[9].mxu1  ;;  %v760_v34 = vadd.f32 %v2478_v44, %v740_v55 }
 0x35c   : > { %v703_v59 = vpop.f32.mrb[10].mxu0  ;;  %v743_v60 = vpop.f32.mrb[10].mxu1  ;;  %v753_v27 = vadd.f32 %v701_v57, %v662_v25  ;;  %v773_v58 = vunpack.c.h.bf16 %v1505_v47  ;;  %v774_v25 = vunpack.c.h.bf16 %v2576_v31 }
 0x35d   : > { %v1502_v61 = vmul.f32 -1.442695, %v746_v56  ;;  %v704_v62 = vpop.f32.mrb[11].mxu0  ;;  %v1667_v63 = vpop.f32.mrb[11].mxu1 }
 0x35e   : > { %v1503_v28 = vmul.f32 -1.442695, %v753_v27 }
 0x35f   : > { %1901 = vpow2.f32 %v1502_v61 }
 0x360   : > { %1903 = vpow2.f32 %v1503_v28 }
 0x369   : > { %v1902_v29 = vpop.eup %1901 }
 0x36a   : > { %v750_v30 = vadd.f32 1.0, %v1902_v29  ;;  %v1904_v32 = vpop.eup %1903 }
 0x36b   : > { %v757_v38 = vadd.f32 1.0, %v1904_v32 }
 0x36c   : > { %1905 = vrcp.f32 %v750_v30 }
 0x376   : > { %v1906_v35 = vpop.eup %1905 }
 0x377   : > { %v761_v36 = vmul.f32 %v1906_v35, %v760_v34 }
 0x379   : > { %v762_v37 = vadd.f32 %v761_v36, %v663_v33 }
 0x37b   : > { %1907 = vtanh.f32 %v762_v37 }
 0x37c   : > { %1909 = vrcp.f32 %v757_v38  ;;  %v1510_v38 = vld [vmem:[%s2314_s4 + $0x30] sm:$0xff] }
 0x385   : > { %v1908_v39 = vpop.eup %1907 }
 0x386   : > { %v764_v40 = vsub.f32 %v2533_v51, %v1908_v39  ;;  %v1910_v41 = vpop.eup %1909 }
 0x388   : > { %v765_v42 = vmul.f32 %v1910_v41, %v764_v40 }
 0x38a   : > { %v2581_v43 = vadd.f32 %v1908_v39, %v765_v42  ;;  %v883_v39 = vunpack.c.l.bf16 %v1510_v38 }
 0x38c   : > { %1504 = vst [vmem:[%s2488_s23 + $0x10] sm:$0xff] %v2581_v43  ;;  %v775_v46 = vpack.c.bf16 %v2581_v43, %v2581_v43 }
 0x38e   : > { %809 = vmatmul.mubr.bf16.vlgmr.msra.gmra.mrb[12].mxu0 %v775_v46  ;;  %1685 = vmatmul.mubr.bf16.vlgmr.msra.gmra.mrb[12].mxu1 %v775_v46 }
 0x38f   : > { %888 = vmatpush1.bf16.msra.mxu0 %v2336_v3  ;;  %1689 = vmatpush3.bf16.msra.mxu1 %v2359_v9 }
 0x390   : > { %889 = vmatprep.subr.bf16.mxu0 %v2340_v4  ;;  %1690 = vmatprep.subr.bf16.mxu1 %v2121_v0 }
 0x391   : > { %919 = vmatprep.mubr.bf16.mxu0 %v2122_v1  ;;  %1704 = vmatprep.mubr.msk.bf16.mxu1 %vm2123_vm0, %v2121_v0 }
 0x393   : > { %890 = vmatpush1.bf16.msra.mxu0 %v2344_v5  ;;  %1691 = vmatpush3.bf16.msra.mxu1 %v2372_v12 }
 0x394   : > { %891 = vmatprep.subr.bf16.mxu0 %v2348_v6  ;;  %1692 = vmatprep.subr.bf16.mxu1 %v2121_v0 }
 0x397   : > { %892 = vmatpush1.bf16.msra.mxu0 %v2352_v7  ;;  %1693 = vmatpush3.bf16.msra.mxu1 %v2380_v14 }
 0x398   : > { %893 = vmatprep.subr.bf16.mxu0 %v2356_v8  ;;  %1694 = vmatprep.subr.bf16.mxu1 %v2121_v0 }
 0x39b   : > { %894 = vmatpush1.bf16.msra.mxu0 %v2363_v10  ;;  %1695 = vmatpush3.bf16.msra.mxu1 %v2393_v17 }
 0x39c   : > { %895 = vmatprep.subr.bf16.mxu0 %v2368_v11  ;;  %1696 = vmatprep.subr.bf16.mxu1 %v2121_v0 }
 0x39f   : > { %896 = vmatpush1.bf16.msra.mxu0 %v2375_v13  ;;  %1697 = vmatpush3.bf16.msra.mxu1 %v2406_v20 }
 0x3a0   : > { %897 = vmatprep.subr.bf16.mxu0 %v2384_v15  ;;  %1698 = vmatprep.subr.bf16.mxu1 %v2121_v0 }
 0x3a3   : > { %898 = vmatpush1.bf16.msra.mxu0 %v2389_v16  ;;  %1699 = vmatpush3.bf16.msra.mxu1 %v2419_v23 }
 0x3a4   : > { %899 = vmatprep.subr.bf16.mxu0 %v2397_v18  ;;  %1700 = vmatprep.subr.bf16.mxu1 %v2121_v0 }
 0x3a7   : > { %900 = vmatpush1.bf16.msra.mxu0 %v2402_v19  ;;  %1701 = vmatpush3.bf16.msra.mxu1 %v2426_v24 }
 0x3a8   : > { %901 = vmatprep.subr.bf16.mxu0 %v2410_v21  ;;  %1702 = vmatprep.subr.bf16.mxu1 %v2121_v0 }
 0x3ab   : > { %902 = vmatpush1.bf16.msra.mxu0 %v2415_v22  ;;  %1703 = vmatpush3.bf16.msra.mxu1 %v2432_v26 }
 0x3ac   : > { %998 = vmatprep.subr.bf16.mxu0 %v2333_v2  ;;  %1708 = vmatprep.subr.bf16.mxu1 %v2121_v0 }
 0x461   : > { %v810_v49 = vpop.f32.mrb[12].mxu0  ;;  %v851_v50 = vpop.f32.mrb[12].mxu1 }
 0x462   : > { %v857_v51 = vadd.f32 %v810_v49, %v772_v48  ;;  %v812_v45 = vpop.f32.mrb[13].mxu0  ;;  %v1686_v52 = vpop.f32.mrb[13].mxu1  ;;  %v871_v27 = vadd.f32 %v2478_v44, %v851_v50 }
 0x463   : > { %v814_v53 = vpop.f32.mrb[14].mxu0  ;;  %v854_v54 = vpop.f32.mrb[14].mxu1  ;;  %v864_v59 = vadd.f32 %v812_v45, %v773_v58  ;;  %v884_v45 = vunpack.c.h.bf16 %v1510_v38 }
 0x464   : > { %v1507_v55 = vmul.f32 -1.442695, %v857_v51  ;;  %v815_v56 = vpop.f32.mrb[15].mxu0  ;;  %v1687_v57 = vpop.f32.mrb[15].mxu1 }
 0x465   : > { %v1508_v60 = vmul.f32 -1.442695, %v864_v59  ;;  %v2669_v56 = vld [vmem:[%s2314_s4 + $0x38] ss:$12 sps:$4 sm:$0xff]  }
 0x466   : > { %1911 = vpow2.f32 %v1507_v55  ;;  %v885_v58 = vunpack.c.l.bf16 %v2669_v56 }
 0x467   : > { %1913 = vpow2.f32 %v1508_v60 }
 0x470   : > { %v1912_v61 = vpop.eup %1911 }
 0x471   : > { %v861_v62 = vadd.f32 1.0, %v1912_v61  ;;  %v1914_v63 = vpop.eup %1913 }
 0x472   : > { %v868_v32 = vadd.f32 1.0, %v1914_v63 }
 0x473   : > { %1915 = vrcp.f32 %v861_v62 }
 0x47d   : > { %v1916_v28 = vpop.eup %1915 }
 0x47e   : > { %v872_v29 = vmul.f32 %v1916_v28, %v871_v27 }
 0x480   : > { %v873_v30 = vadd.f32 %v872_v29, %v774_v25 }
 0x482   : > { %1917 = vtanh.f32 %v873_v30 }
 0x483   : > { %1919 = vrcp.f32 %v868_v32 }
 0x48c   : > { %v1918_v33 = vpop.eup %1917 }
 0x48d   : > { %v875_v34 = vsub.f32 %v2581_v43, %v1918_v33  ;;  %v1920_v35 = vpop.eup %1919 }
 0x48f   : > { %v876_v36 = vmul.f32 %v1920_v35, %v875_v34 }
 0x491   : > { %v2626_v37 = vadd.f32 %v1918_v33, %v876_v36 }
 0x493   : > { %1509 = vst [vmem:[%s2488_s23 + $0x18] sm:$0xff] %v2626_v37  ;;  %v886_v31 = vpack.c.bf16 %v2626_v37, %v2626_v37 }
 0x495   : > { %920 = vmatmul.mubr.bf16.vlgmr.msra.gmra.mrb[16].mxu0 %v886_v31  ;;  %1705 = vmatmul.mubr.bf16.vlgmr.msra.gmra.mrb[16].mxu1 %v886_v31 }
 0x496   : > { %999 = vmatpush1.bf16.msra.mxu0 %v2336_v3  ;;  %1709 = vmatpush3.bf16.msra.mxu1 %v2359_v9 }
 0x497   : > { %1000 = vmatprep.subr.bf16.mxu0 %v2340_v4  ;;  %1710 = vmatprep.subr.bf16.mxu1 %v2121_v0 }
 0x498   : > { %1030 = vmatprep.mubr.bf16.mxu0 %v2122_v1  ;;  %1724 = vmatprep.mubr.msk.bf16.mxu1 %vm2123_vm0, %v2121_v0 }
 0x49a   : > { %1001 = vmatpush1.bf16.msra.mxu0 %v2344_v5  ;;  %1711 = vmatpush3.bf16.msra.mxu1 %v2372_v12 }
 0x49b   : > { %1002 = vmatprep.subr.bf16.mxu0 %v2348_v6  ;;  %1712 = vmatprep.subr.bf16.mxu1 %v2121_v0 }
 0x49e   : > { %1003 = vmatpush1.bf16.msra.mxu0 %v2352_v7  ;;  %1713 = vmatpush3.bf16.msra.mxu1 %v2380_v14 }
 0x49f   : > { %1004 = vmatprep.subr.bf16.mxu0 %v2356_v8  ;;  %1714 = vmatprep.subr.bf16.mxu1 %v2121_v0 }
 0x4a2   : > { %1005 = vmatpush1.bf16.msra.mxu0 %v2363_v10  ;;  %1715 = vmatpush3.bf16.msra.mxu1 %v2393_v17 }
 0x4a3   : > { %1006 = vmatprep.subr.bf16.mxu0 %v2368_v11  ;;  %1716 = vmatprep.subr.bf16.mxu1 %v2121_v0 }
 0x4a6   : > { %1007 = vmatpush1.bf16.msra.mxu0 %v2375_v13  ;;  %1717 = vmatpush3.bf16.msra.mxu1 %v2406_v20 }
 0x4a7   : > { %1008 = vmatprep.subr.bf16.mxu0 %v2384_v15  ;;  %1718 = vmatprep.subr.bf16.mxu1 %v2121_v0 }
 0x4aa   : > { %1009 = vmatpush1.bf16.msra.mxu0 %v2389_v16  ;;  %1719 = vmatpush3.bf16.msra.mxu1 %v2419_v23 }
 0x4ab   : > { %1010 = vmatprep.subr.bf16.mxu0 %v2397_v18  ;;  %1720 = vmatprep.subr.bf16.mxu1 %v2121_v0 }
 0x4ae   : > { %1011 = vmatpush1.bf16.msra.mxu0 %v2402_v19  ;;  %1721 = vmatpush3.bf16.msra.mxu1 %v2426_v24 }
 0x4af   : > { %1012 = vmatprep.subr.bf16.mxu0 %v2410_v21  ;;  %1722 = vmatprep.subr.bf16.mxu1 %v2121_v0 }
 0x4b2   : > { %1013 = vmatpush1.bf16.msra.mxu0 %v2415_v22  ;;  %1723 = vmatpush3.bf16.msra.mxu1 %v2432_v26 }
 0x4b3   : > { %1109 = vmatprep.subr.bf16.mxu0 %v2333_v2  ;;  %1728 = vmatprep.subr.bf16.mxu1 %v2121_v0 }
 0x568   : > { %v921_v40 = vpop.f32.mrb[16].mxu0  ;;  %v962_v41 = vpop.f32.mrb[16].mxu1 }
 0x569   : > { %v968_v42 = vadd.f32 %v921_v40, %v883_v39  ;;  %v923_v43 = vpop.f32.mrb[17].mxu0  ;;  %v1706_v46 = vpop.f32.mrb[17].mxu1  ;;  %v982_v59 = vadd.f32 %v2478_v44, %v962_v41  ;;  %v996_v41 = vunpack.c.h.bf16 %v2669_v56  ;;  %v1963_v56 = vld [vmem:[%s2322_s11 + $0x18] ss:$12 sps:$4 sm:$0xff]  }
 0x56a   : > { %v925_v47 = vpop.f32.mrb[18].mxu0  ;;  %v965_v48 = vpop.f32.mrb[18].mxu1  ;;  %v975_v52 = vadd.f32 %v923_v43, %v884_v45 }
 0x56b   : > { %v1512_v49 = vmul.f32 -1.442695, %v968_v42  ;;  %v926_v50 = vpop.f32.mrb[19].mxu0  ;;  %v1707_v51 = vpop.f32.mrb[19].mxu1 }
 0x56c   : > { %v1513_v53 = vmul.f32 -1.442695, %v975_v52 }
 0x56d   : > { %1921 = vpow2.f32 %v1512_v49 }
 0x56e   : > { %1923 = vpow2.f32 %v1513_v53 }
 0x577   : > { %v1922_v54 = vpop.eup %1921 }
 0x578   : > { %v972_v55 = vadd.f32 1.0, %v1922_v54  ;;  %v1924_v57 = vpop.eup %1923  ;;  %v1961_v54 = vld [vmem:[%s2322_s11] ss:$12 sps:$4 sm:$0xff]  }
 0x579   : > { %v979_v63 = vadd.f32 1.0, %v1924_v57  ;;  %v1964_v57 = vld [vmem:[%s2322_s11 + $0x34] ss:$12 sps:$4 sm:$0xff]  }
 0x57a   : > { %1925 = vrcp.f32 %v972_v55  ;;  %v1962_v55 = vld [vmem:[%s2322_s11 + $0x1c] ss:$12 sps:$4 sm:$0xff]  }
 0x584   : > { %v1926_v60 = vpop.eup %1925 }
 0x585   : > { %v983_v61 = vmul.f32 %v1926_v60, %v982_v59  ;;  %v1968_v59 = vld [vmem:[%s2322_s11 + $0x64] ss:$12 sps:$4 sm:$0xff]  }
 0x587   : > { %v984_v62 = vadd.f32 %v983_v61, %v885_v58  ;;  %v1966_v58 = vld [vmem:[%s2322_s11 + $0x4c] ss:$12 sps:$4 sm:$0xff]  }
 0x589   : > { %1927 = vtanh.f32 %v984_v62 }
 0x58a   : > { %1929 = vrcp.f32 %v979_v63 }
 0x593   : > { %v1928_v25 = vpop.eup %1927 }
 0x594   : > { %v986_v27 = vsub.f32 %v2626_v37, %v1928_v25  ;;  %v1930_v28 = vpop.eup %1929 }
 0x596   : > { %v987_v29 = vmul.f32 %v1930_v28, %v986_v27 }
 0x598   : > { %v2674_v30 = vadd.f32 %v1928_v25, %v987_v29 }
 0x59a   : > { %1514 = vst [vmem:[%s2488_s23 + $0x20] sm:$0xff] %v2674_v30  ;;  %v997_v32 = vpack.c.bf16 %v2674_v30, %v2674_v30 }
 0x59c   : > { %1031 = vmatmul.mubr.bf16.vlgmr.msra.gmra.mrb[20].mxu0 %v997_v32  ;;  %1725 = vmatmul.mubr.bf16.vlgmr.msra.gmra.mrb[20].mxu1 %v997_v32 }
 0x59d   : > { %1110 = vmatpush1.bf16.msra.mxu0 %v2336_v3  ;;  %1729 = vmatpush3.bf16.msra.mxu1 %v2359_v9  ;;  %v1515_v3 = vld [vmem:[%s2314_s4 + $0x3c] sm:$0xff] }
 0x59e   : > { %1111 = vmatprep.subr.bf16.mxu0 %v2340_v4  ;;  %1730 = vmatprep.subr.bf16.mxu1 %v2121_v0  ;;  %v994_v4 = vunpack.c.l.bf16 %v1515_v3  ;;  %v995_v37 = vunpack.c.h.bf16 %v1515_v3 }
 0x59f   : > { %1141 = vmatprep.mubr.bf16.mxu0 %v2122_v1  ;;  %1744 = vmatprep.mubr.msk.bf16.mxu1 %vm2123_vm0, %v2121_v0 }
 0x5a1   : > { %1112 = vmatpush1.bf16.msra.mxu0 %v2344_v5  ;;  %1731 = vmatpush3.bf16.msra.mxu1 %v2372_v12 }
 0x5a2   : > { %1113 = vmatprep.subr.bf16.mxu0 %v2348_v6  ;;  %1732 = vmatprep.subr.bf16.mxu1 %v2121_v0 }
 0x5a5   : > { %1114 = vmatpush1.bf16.msra.mxu0 %v2352_v7  ;;  %1733 = vmatpush3.bf16.msra.mxu1 %v2380_v14 }
 0x5a6   : > { %1115 = vmatprep.subr.bf16.mxu0 %v2356_v8  ;;  %1734 = vmatprep.subr.bf16.mxu1 %v2121_v0 }
 0x5a9   : > { %1116 = vmatpush1.bf16.msra.mxu0 %v2363_v10  ;;  %1735 = vmatpush3.bf16.msra.mxu1 %v2393_v17 }
 0x5aa   : > { %1117 = vmatprep.subr.bf16.mxu0 %v2368_v11  ;;  %1736 = vmatprep.subr.bf16.mxu1 %v2121_v0 }
 0x5ad   : > { %1118 = vmatpush1.bf16.msra.mxu0 %v2375_v13  ;;  %1737 = vmatpush3.bf16.msra.mxu1 %v2406_v20 }
 0x5ae   : > { %1119 = vmatprep.subr.bf16.mxu0 %v2384_v15  ;;  %1738 = vmatprep.subr.bf16.mxu1 %v2121_v0 }
 0x5b1   : > { %1120 = vmatpush1.bf16.msra.mxu0 %v2389_v16  ;;  %1739 = vmatpush3.bf16.msra.mxu1 %v2419_v23 }
 0x5b2   : > { %1121 = vmatprep.subr.bf16.mxu0 %v2397_v18  ;;  %1740 = vmatprep.subr.bf16.mxu1 %v2121_v0 }
 0x5b5   : > { %1122 = vmatpush1.bf16.msra.mxu0 %v2402_v19  ;;  %1741 = vmatpush3.bf16.msra.mxu1 %v2426_v24 }
 0x5b6   : > { %1123 = vmatprep.subr.bf16.mxu0 %v2410_v21  ;;  %1742 = vmatprep.subr.bf16.mxu1 %v2121_v0 }
 0x5b9   : > { %1124 = vmatpush1.bf16.msra.mxu0 %v2415_v22  ;;  %1743 = vmatpush3.bf16.msra.mxu1 %v2432_v26 }
 0x5ba   : > { %1220 = vmatprep.subr.bf16.mxu0 %v2333_v2  ;;  %1748 = vmatprep.subr.bf16.mxu1 %v2121_v0 }
 0x66f   : > { %v1032_v5 = vpop.f32.mrb[20].mxu0  ;;  %v1073_v6 = vpop.f32.mrb[20].mxu1 }
 0x670   : > { %v1079_v7 = vadd.f32 %v1032_v5, %v994_v4  ;;  %v1034_v8 = vpop.f32.mrb[21].mxu0  ;;  %v1726_v10 = vpop.f32.mrb[21].mxu1  ;;  %v1093_v42 = vadd.f32 %v2478_v44, %v1073_v6 }
 0x671   : > { %v1036_v11 = vpop.f32.mrb[22].mxu0  ;;  %v1076_v33 = vpop.f32.mrb[22].mxu1  ;;  %v1086_v31 = vadd.f32 %v1034_v8, %v995_v37  ;;  %v1525_v10 = vld [vmem:[%s2314_s4 + $0x54] sm:$0xff] }
 0x672   : > { %v1517_v34 = vmul.f32 -1.442695, %v1079_v7  ;;  %v1037_v35 = vpop.f32.mrb[23].mxu0  ;;  %v1727_v36 = vpop.f32.mrb[23].mxu1  ;;  %v1216_v11 = vunpack.c.l.bf16 %v1525_v10 }
 0x673   : > { %v1518_v38 = vmul.f32 -1.442695, %v1086_v31 }
 0x674   : > { %1931 = vpow2.f32 %v1517_v34 }
 0x675   : > { %1933 = vpow2.f32 %v1518_v38 }
 0x67e   : > { %v1932_v39 = vpop.eup %1931 }
 0x67f   : > { %v1083_v2 = vadd.f32 1.0, %v1932_v39  ;;  %v1934_v40 = vpop.eup %1933 }
 0x680   : > { %v1090_v48 = vadd.f32 1.0, %v1934_v40 }
 0x681   : > { %1935 = vrcp.f32 %v1083_v2 }
 0x68b   : > { %v1936_v43 = vpop.eup %1935 }
 0x68c   : > { %v1094_v46 = vmul.f32 %v1936_v43, %v1093_v42 }
 0x68e   : > { %v1095_v47 = vadd.f32 %v1094_v46, %v996_v41  ;;  %v1217_v41 = vunpack.c.h.bf16 %v1525_v10 }
 0x690   : > { %1937 = vtanh.f32 %v1095_v47 }
 0x691   : > { %1939 = vrcp.f32 %v1090_v48 }
 0x69a   : > { %v1938_v49 = vpop.eup %1937 }
 0x69b   : > { %v1097_v50 = vsub.f32 %v2674_v30, %v1938_v49  ;;  %v1940_v51 = vpop.eup %1939 }
 0x69d   : > { %v1098_v45 = vmul.f32 %v1940_v51, %v1097_v50 }
 0x69f   : > { %v2719_v52 = vadd.f32 %v1938_v49, %v1098_v45 }
 0x6a1   : > { %1519 = vst [vmem:[%s2488_s23 + $0x28] sm:$0xff] %v2719_v52  ;;  %v1108_v53 = vpack.c.bf16 %v2719_v52, %v2719_v52 }
 0x6a3   : > { %1142 = vmatmul.mubr.bf16.vlgmr.msra.gmra.mrb[24].mxu0 %v1108_v53  ;;  %1745 = vmatmul.mubr.bf16.vlgmr.msra.gmra.mrb[24].mxu1 %v1108_v53 }
 0x6a4   : > { %1221 = vmatpush1.bf16.msra.mxu0 %v1961_v54  ;;  %1749 = vmatpush3.bf16.msra.mxu1 %v2359_v9  ;;  %v1965_v9 = vld [vmem:[%s2322_s11 + $0x30] ss:$12 sps:$4 sm:$0xff]  }
 0x6a5   : > { %1222 = vmatprep.subr.bf16.mxu0 %v1962_v55  ;;  %1750 = vmatprep.subr.bf16.mxu1 %v2121_v0 }
 0x6a6   : > { %1252 = vmatprep.mubr.bf16.mxu0 %v2122_v1  ;;  %1764 = vmatprep.mubr.msk.bf16.mxu1 %vm2123_vm0, %v2121_v0  ;;  %v1967_v1 = vld [vmem:[%s2322_s11 + $0x48] ss:$12 sps:$4 sm:$0xff]  }
 0x6a8   : > { %1223 = vmatpush1.bf16.msra.mxu0 %v1963_v56  ;;  %1751 = vmatpush3.bf16.msra.mxu1 %v2372_v12  ;;  %v1520_v12 = vld [vmem:[%s2314_s4 + $0x48] sm:$0xff] }
 0x6a9   : > { %1224 = vmatprep.subr.bf16.mxu0 %v1964_v57  ;;  %1752 = vmatprep.subr.bf16.mxu1 %v2121_v0 }
 0x6ac   : > { %1225 = vmatpush1.bf16.msra.mxu0 %v1965_v9  ;;  %1753 = vmatpush3.bf16.msra.mxu1 %v2380_v14 }
 0x6ad   : > { %1226 = vmatprep.subr.bf16.mxu0 %v1966_v58  ;;  %1754 = vmatprep.subr.bf16.mxu1 %v2121_v0 }
 0x6b0   : > { %1227 = vmatpush1.bf16.msra.mxu0 %v1967_v1  ;;  %1755 = vmatpush3.bf16.msra.mxu1 %v2393_v17 }
 0x6b1   : > { %1228 = vmatprep.subr.bf16.mxu0 %v1968_v59  ;;  %1756 = vmatprep.subr.bf16.mxu1 %v2121_v0 }
 0x6b4   : > { %1229 = vmatpush1.bf16.msra.mxu0 %v2375_v13  ;;  %1757 = vmatpush3.bf16.msra.mxu1 %v2406_v20  ;;  %v1105_v13 = vunpack.c.l.bf16 %v1520_v12 }
 0x6b5   : > { %1230 = vmatprep.subr.bf16.mxu0 %v2384_v15  ;;  %1758 = vmatprep.subr.bf16.mxu1 %v2121_v0 }
 0x6b8   : > { %1231 = vmatpush1.bf16.msra.mxu0 %v2389_v16  ;;  %1759 = vmatpush3.bf16.msra.mxu1 %v2419_v23 }
 0x6b9   : > { %1232 = vmatprep.subr.bf16.mxu0 %v2397_v18  ;;  %1760 = vmatprep.subr.bf16.mxu1 %v2121_v0 }
 0x6bc   : > { %1233 = vmatpush1.bf16.msra.mxu0 %v2402_v19  ;;  %1761 = vmatpush3.bf16.msra.mxu1 %v2426_v24 }
 0x6bd   : > { %1234 = vmatprep.subr.bf16.mxu0 %v2410_v21  ;;  %1762 = vmatprep.subr.bf16.mxu1 %v2121_v0  ;;  %v1106_v21 = vunpack.c.h.bf16 %v1520_v12 }
 0x6c0   : > { %1235 = vmatpush1.bf16.msra.mxu0 %v2415_v22  ;;  %1763 = vmatpush3.bf16.msra.mxu1 %v2432_v26  ;;  %v1521_v26 = vld [vmem:[%s2314_s4 + $0x50] ss:$12 sps:$4 sm:$0xff]   ;;  %s2029_s4 = scalar_lea.vmem %s2772_s30, 1024 }
 0x6c1   : > { %v1107_v25 = vunpack.c.l.bf16 %v1521_v26  ;;  %v1218_v49 = vunpack.c.h.bf16 %v1521_v26  ;;  %p2030_p3 = scmp.ne.s32.totalorder %s2772_s30, %s2029_s4  ;;  %p2037_p9 = scmp.lt.s32.totalorder %s2035_s8, %s2029_s4 }
 0x6c3   : > { %p2031_p13 = pnand %p2030_p3, %p2836_p12  ;;  %p2038_p11 = por %p2037_p9, %p2036_p10 }
 0x6c5   : > { %p2032_p7 = pneg %p2031_p13 }
 0x6c7   : > { %p2039_p1 = pnand %p2038_p11, %p2032_p7 }
 0x776   : > { %v1143_v14 = vpop.f32.mrb[24].mxu0  ;;  %v1184_v15 = vpop.f32.mrb[24].mxu1 }
 0x777   : > { %v1190_v16 = vadd.f32 %v1143_v14, %v1105_v13  ;;  %v1145_v17 = vpop.f32.mrb[25].mxu0  ;;  %v1746_v18 = vpop.f32.mrb[25].mxu1  ;;  %v1204_v27 = vadd.f32 %v2478_v44, %v1184_v15 }
 0x778   : > { %v1147_v20 = vpop.f32.mrb[26].mxu0  ;;  %v1187_v19 = vpop.f32.mrb[26].mxu1  ;;  %v1197_v0 = vadd.f32 %v1145_v17, %v1106_v21 }
 0x779   : > { %v1522_v23 = vmul.f32 -1.442695, %v1190_v16  ;;  %v1148_v24 = vpop.f32.mrb[27].mxu0  ;;  %v1747_v60 = vpop.f32.mrb[27].mxu1 }
 0x77a   : > { %v1523_v61 = vmul.f32 -1.442695, %v1197_v0 }
 0x77b   : > { %1941 = vpow2.f32 %v1522_v23 }
 0x77c   : > { %1943 = vpow2.f32 %v1523_v61 }
 0x785   : > { %v1942_v22 = vpop.eup %1941 }
 0x786   : > { %v1194_v62 = vadd.f32 1.0, %v1942_v22  ;;  %v1944_v63 = vpop.eup %1943 }
 0x787   : > { %v1201_v32 = vadd.f32 1.0, %v1944_v63 }
 0x788   : > { %1945 = vrcp.f32 %v1194_v62 }
 0x792   : > { %v1946_v28 = vpop.eup %1945 }
 0x793   : > { %v1205_v29 = vmul.f32 %v1946_v28, %v1204_v27 }
 0x795   : > { %v1206_v30 = vadd.f32 %v1205_v29, %v1107_v25 }
 0x797   : > { %1947 = vtanh.f32 %v1206_v30 }
 0x798   : > { %1949 = vrcp.f32 %v1201_v32 }
 0x7a1   : > { %v1948_v3 = vpop.eup %1947 }
 0x7a2   : > { %v1208_v4 = vsub.f32 %v2719_v52, %v1948_v3  ;;  %v1950_v5 = vpop.eup %1949 }
 0x7a4   : > { %v1209_v6 = vmul.f32 %v1950_v5, %v1208_v4 }
 0x7a6   : > { %v1210_v7 = vadd.f32 %v1948_v3, %v1209_v6 }
 0x7a8   : > { %1524 = vst [vmem:[%s2488_s23 + $0x30] sm:$0xff] %v1210_v7  ;;  %v1219_v8 = vpack.c.bf16 %v1210_v7, %v1210_v7 }
 0x7aa   : > { %1253 = vmatmul.mubr.bf16.vlgmr.msra.gmra.mrb[28].mxu0 %v1219_v8  ;;  %1765 = vmatmul.mubr.bf16.vlgmr.msra.gmra.mrb[28].mxu1 %v1219_v8 }
 0x87d   : > { %v1254_v33 = vpop.f32.mrb[28].mxu0  ;;  %v1295_v34 = vpop.f32.mrb[28].mxu1 }
 0x87e   : > { %v1301_v35 = vadd.f32 %v1254_v33, %v1216_v11  ;;  %v1256_v36 = vpop.f32.mrb[29].mxu0  ;;  %v1766_v37 = vpop.f32.mrb[29].mxu1  ;;  %v1315_v50 = vadd.f32 %v2478_v44, %v1295_v34 }
 0x87f   : > { %v1258_v31 = vpop.f32.mrb[30].mxu0  ;;  %v1298_v38 = vpop.f32.mrb[30].mxu1  ;;  %v1308_v42 = vadd.f32 %v1256_v36, %v1217_v41 }
 0x880   : > { %v1527_v39 = vmul.f32 -1.442695, %v1301_v35  ;;  %v1259_v2 = vpop.f32.mrb[31].mxu0  ;;  %v1767_v40 = vpop.f32.mrb[31].mxu1 }
 0x881   : > { %v1528_v43 = vmul.f32 -1.442695, %v1308_v42 }
 0x882   : > { %1951 = vpow2.f32 %v1527_v39 }
 0x883   : > { %1953 = vpow2.f32 %v1528_v43 }
 0x88c   : > { %v1952_v46 = vpop.eup %1951 }
 0x88d   : > { %v1305_v47 = vadd.f32 1.0, %v1952_v46  ;;  %v1954_v48 = vpop.eup %1953 }
 0x88e   : > { %v1312_v53 = vadd.f32 1.0, %v1954_v48 }
 0x88f   : > { %1955 = vrcp.f32 %v1305_v47 }
 0x899   : > { %v1956_v51 = vpop.eup %1955 }
 0x89a   : > { %v1316_v45 = vmul.f32 %v1956_v51, %v1315_v50 }
 0x89c   : > { %v1317_v52 = vadd.f32 %v1316_v45, %v1218_v49 }
 0x89e   : > { %1957 = vtanh.f32 %v1317_v52 }
 0x89f   : > { %1959 = vrcp.f32 %v1312_v53 }
 0x8a8   : > { %v1958_v54 = vpop.eup %1957 }
 0x8a9   : > { %v1319_v55 = vsub.f32 %v1210_v7, %v1958_v54  ;;  %v1960_v56 = vpop.eup %1959 }
 0x8ab   : > { %v1320_v57 = vmul.f32 %v1960_v56, %v1319_v55 }
 0x8ad   : > { %v1321_v44 = vadd.f32 %v1958_v54, %v1320_v57 }
 0x8af   : > { %1529 = vst [vmem:[%s2488_s23 + $0x38] sm:$0xff] %v1321_v44 }
 0x8b0   : > { %2042 = shalt.err (!%p2039_p1)
}
 0x8b1   : > { %s2043_s11 = scalar_lea.hbm %s2770_s21, 1024  ;;  %s2047_s29 = scalar_lea.hbm %s2825_s3, 2048 }
 0x8b2   : > { %p2044_p5 = scmp.ne.s32.totalorder %s2770_s21, %s2043_s11  ;;  %p2048_p6 = scmp.lt.u32.totalorder %s2770_s21, %s2825_s3 }
 0x8b3   : > { %p2049_p8 = scmp.lt.u32.totalorder %s2047_s29, %s2043_s11  ;;  %p2051_p3 = scmp.lt.u32.totalorder %s2043_s11, %s2770_s21 }
 0x8b4   : > { %p2045_p2 = pnand %p2044_p5, %p2836_p12 }
 0x8b5   : > { %p2050_p0 = por %p2049_p8, %p2048_p6 }
 0x8b6   : > { %p2046_p4 = pneg %p2045_p2 }
 0x8b7   : > { %p2052_p13 = por %p2051_p3, %p2050_p0 }
 0x8b9   : > { %p2053_p7 = pnand %p2052_p13, %p2046_p4 }
 0x8bb   : > { %2056 = shalt.err (!%p2053_p7)
}
 0x8bc   : > { %s2126_s23 = smov 128   ;;  %s2127_s18 = smov 8  }
 0x8bd   : > { %1778 = dma.vmem_to_hbm [thread:$0]  (%p2836_p12), %s2772_s30, 1024, %s2770_s21, %s1326_s22, %s2126_s23, %s2126_s23, %s2127_s18  }
 0x8be PF: > { %s1356_s10 = sand.u32 1, %s2095_s12   ;;  %p2837_p10 = scmp.ne.s32.totalorder %s2831_s27, 0 }
 0x8bf   : > { %p2838_p9 = scmp.ge.s32.totalorder %s2115_s17, 2  ;;  %s1357_s6 = scalar_lea.sflag [#allocation5], %s1356_s10 }
 0x8c1   : > { %p1788_p11 = pnand %p2838_p9, %p2837_p10 }
 0x8c3   : > { %2090 = dma.done.wait (!%p1788_p11), %s1357_s6, 1024  }
 0x8c4   : > { %2092 = vsyncadd (!%p1788_p11), %s1357_s6, 4294966272  ;;  %s22_s17 = sadd.s32 1, %s2115_s17   ;;  %s2839_s12 = smov %s2099_s13 }
 0x8c5   : > { %p19_p1 = scmp.ge.s32.totalorder %s22_s17, 4   ;;  %s2840_s13 = smov %s2103_s14 }
 0x8c6   : > { %s2841_s14 = smov %s2204_s26  ;;  %s2842_s15 = smov %s2111_s16 }
 0x8c7   : > { %s2843_s16 = smov %s2845_s20  ;;  %21 = sbr.rel (!%p19_p1) target bundleno = 8 (0x8), region = 111 }
 0x8ce   :  { %1362 = vsyncpa [#allocation4], 1 }
 0x8cf   :  { %1364 = vsyncpa [#allocation4 + $0x1], 1 }
 0x8d0   :  { %1365 = vsyncpa [#allocation7], 1 }
 0x8d1   :  { %1367 = vsyncpa [#allocation7 + $0x1], 1 }
 0x8d2   :  { %1368 = vsyncpa [#allocation5], 1 }
 0x8d3   :  { %1370 = vsyncpa [#allocation5 + $0x1], 1 }

</bundles_post_ra>
